<compile_context>
chip_gen: v6e
topology: v6e:2x2x1
jax: 0.10.0
libtpu: 0.0.40
codegen_flags: <defaults>
</compile_context>

<pallas_src>
import math
import functools

import jax
import jax.numpy as jnp
from jax import lax
from jax.experimental import pallas as pl
from jax.experimental.pallas import tpu as pltpu

# ----------------------------------------------------------------------------
# Small config consistent with the module's forward
# ----------------------------------------------------------------------------
B = 2              # batch
C_IN = 4           # enc_in (channels)
SEQ_LEN = 16       # L
PRED_LEN = 8
PATCH_LEN = 4
STRIDE = 4
PADDING_PATCH = "end"
ALPHA = 0.3        # EMA alpha (ma_type == 'ema')
EPS_BN = 1e-5
EPS_LN = 1e-5
EPS_REVIN = 1e-5

PATCH_NUM = (SEQ_LEN - PATCH_LEN) // STRIDE + 1 + (1 if PADDING_PATCH == "end" else 0)  # 5
DIM = PATCH_LEN * PATCH_LEN          # patch embedding dim = 16
N_ROWS = B * C_IN                    # channel-independent rows = 8
CTX = PRED_LEN * 2                   # context vector / LSTM hidden size = 16
NGATE = 4 * CTX                      # LSTM gate width = 64
PD = PATCH_NUM * DIM                 # 80  (patch-major flattened embedding width)
PP = PATCH_NUM * PATCH_LEN           # 20  (patch-major flattened patch width)

F32 = jnp.float32
BF16 = jnp.bfloat16
SLAB_W = 128                         # lane width of both parameter slabs

_dot = functools.partial(jnp.dot, preferred_element_type=F32)


def _bdot(a, b):
    # bf16 MXU operands, f32 accumulation.
    return jnp.dot(a.astype(BF16), b, preferred_element_type=F32)


# ----------------------------------------------------------------------------
# Parameter-slab layouts (shared by the host packer and the kernel's static slices)
# ----------------------------------------------------------------------------
def _make_layout(entries, align):
    layout, off = {}, 0
    for name, r, c in entries:
        layout[name] = (off, r, c)
        off += ((r + align - 1) // align) * align
    return layout, off


# bf16 slab: matmul weights (row offsets 16-aligned for bf16 sublane packing)
_W_ENTRIES = [
    ("wemb", SEQ_LEN, PD),            # (I - EMA) @ (patching + block-diag fc1)
    ("gdw",  PD, PP),                 # depthwise conv1 group-sum
    ("w2bd", PD, PP),                 # block-diagonal fc2
    ("kpw",  PP, PP),                 # pointwise conv2 = kron(pw^T, I)
    ("w3t",  PP, CTX),                # fc3
    ("w4t",  CTX, PRED_LEN),          # fc4
    ("w5pt", SEQ_LEN, CTX),           # EMA @ (fc5 + avgpool1)
    ("w6p",  CTX, PRED_LEN // 2),     # fc6 + avgpool2
    ("w7t",  PRED_LEN // 2, PRED_LEN),  # fc7
    ("wih",  CTX, NGATE),             # LSTM input projection
    ("whh",  CTX, NGATE),             # LSTM recurrent projection
]
W_LAYOUT, W_ROWS = _make_layout(_W_ENTRIES, 16)

# f32 slab: element-wise params + BN column-group averaging matrices (8-aligned rows)
_V_ENTRIES = [
    ("pcol16", PD, PD),
    ("pcol4",  PP, PP),
    ("pack80", 5, PD),                # b1c, dw mask, bn1 w/b, lstm bias
    ("pack20", 7, PP),                # bdw, b2c, pwb, bn2 w/b, bn3 w/b
    ("packs",  9, CTX),               # b3, b5p, ln1 w/b, b4, b7, b6p, ln2 w/b
    ("rowpack", N_ROWS, 4),           # revin w, revin b, fc bias (diag), 1/(w+eps^2)
    ("wsel",   N_ROWS, CTX),          # decoder fc row for the diagonal channel
]
V_LAYOUT, V_ROWS = _make_layout(_V_ENTRIES, 8)


def _slc(ref, layout, name):
    off, r, c = layout[name]
    return ref[off:off + r, 0:c]


def _pack_slab(layout, n_rows, mats, dtype):
    slab = jnp.zeros((n_rows, SLAB_W), dtype=dtype)
    for name, (off, r, c) in layout.items():
        m = mats[name]
        assert m.shape == (r, c), (name, m.shape, (r, c))
        slab = slab.at[off:off + r, 0:c].set(m.astype(dtype))
    return slab


# ----------------------------------------------------------------------------
# In-kernel helpers
# ----------------------------------------------------------------------------
def _gelu(x):
    # exact (erf) GELU, matching torch.nn.GELU() default
    return 0.5 * x * (1.0 + lax.erf(x * (1.0 / math.sqrt(2.0))))


def _bn_cols(x, pcol, w, b):
    # training-mode BatchNorm1d over an [N, patch_num*K] layout where the BN channel is
    # the patch index (columns grouped in blocks of K).  pcol averages each column group
    # (1/(N*K) baked in), so one f32 matmul on [sum(x); sum(x^2)] gives [mean; E[x^2]].
    s = jnp.concatenate([jnp.sum(x, axis=0, keepdims=True),
                         jnp.sum(x * x, axis=0, keepdims=True)], axis=0)   # [2, PK]
    stats = _dot(s, pcol)                                                  # [2, PK]
    m = stats[0:1, :]
    v = stats[1:2, :] - m * m
    return (x - m) * lax.rsqrt(v + EPS_BN) * w + b
    # TODO(synk): eval-mode (running-stats) BatchNorm is not implemented.


def _ln(x, w, b):
    m = jnp.mean(x, axis=1, keepdims=True)
    d = x - m
    v = jnp.mean(d * d, axis=1, keepdims=True)
    return d * lax.rsqrt(v + EPS_LN) * w + b


# ----------------------------------------------------------------------------
# Fused kernel: RevIN -> (EMA-folded) dual-stream network -> LSTM decoder -> denorm
# ----------------------------------------------------------------------------
def fused_kernel(x_ref, w_ref, v_ref, out_ref):
    wm = lambda name: _slc(w_ref, W_LAYOUT, name)   # bf16 matmul weights
    vm = lambda name: _slc(v_ref, V_LAYOUT, name)   # f32 element-wise params

    x = x_ref[...]                                  # [N, L] channel-independent rows
    rowpack = vm("rowpack")                         # [N, 4]
    rw = rowpack[:, 0:1]                            # RevIN affine weight per row
    rb = rowpack[:, 1:2]                            # RevIN affine bias per row
    bfc = rowpack[:, 2:3]                           # decoder fc bias (diag channel)
    inv_rw = rowpack[:, 3:4]                        # 1/(rw + eps^2), precomputed on host

    # ---- RevIN 'norm' (rsqrt-multiply; stdev kept only for the final denorm) ----
    mean = jnp.mean(x, axis=1, keepdims=True)
    xc = x - mean
    var = jnp.mean(xc * xc, axis=1, keepdims=True)
    rstd = lax.rsqrt(var + EPS_REVIN)
    stdev = (var + EPS_REVIN) * rstd
    xn = xc * rstd * rw + rb
    xn_b = xn.astype(BF16)
    # TODO(synk): only ma_type='ema' is implemented ('dema'/'reg' branches not reproduced).

    # ---- packed small parameters (static slices, hoisted once) ----
    pack80 = vm("pack80")
    b1c, dwm = pack80[0:1, :], pack80[1:2, :]
    bn1w, bn1b = pack80[2:3, :], pack80[3:4, :]
    lstmb = pack80[4:5, 0:NGATE]

    pack20 = vm("pack20")
    bdw, b2c, pwb = pack20[0:1, :], pack20[1:2, :], pack20[2:3, :]
    bn2w, bn2b = pack20[3:4, :], pack20[4:5, :]
    bn3w, bn3b = pack20[5:6, :], pack20[6:7, :]

    packs = vm("packs")
    b3, b5p = packs[0:1, :], packs[1:2, :]
    ln1w, ln1b = packs[2:3, :], packs[3:4, :]
    b4 = packs[4:5, 0:PRED_LEN]
    b7 = packs[5:6, 0:PRED_LEN]
    b6p = packs[6:7, 0:PRED_LEN // 2]
    ln2w = packs[7:8, 0:PRED_LEN // 2]
    ln2b = packs[8:9, 0:PRED_LEN // 2]

    pcol16 = vm("pcol16")
    pcol4 = vm("pcol4")
    wsel = vm("wsel")

    # ---- seasonal (non-linear) stream; EMA decomposition folded into wemb ----
    x1 = _gelu(_bdot(xn_b, wm("wemb")) + b1c)            # patching + fc1   [N, P*DIM]
    x1 = _bn_cols(x1, pcol16, bn1w, bn1b)                # bn1 (channel = patch index)

    y = _gelu(_bdot(x1 * dwm, wm("gdw")) + bdw)          # depthwise conv1  [N, P*PL]
    y = _bn_cols(y, pcol4, bn2w, bn2b)                   # bn2
    y = y + _bdot(x1, wm("w2bd")) + b2c                  # residual fc2 (block-diagonal)
    z = _gelu(_bdot(y, wm("kpw")) + pwb)                 # pointwise conv2
    z = _bn_cols(z, pcol4, bn3w, bn3b)                   # bn3
    h = _gelu(_bdot(z, wm("w3t")) + b3)                  # fc3 + gelu
    s_out = _bdot(h, wm("w4t")) + b4                     # fc4 -> [N, pred_len]

    # ---- trend (linear) stream; EMA + AvgPool1d layers folded into the weights ----
    t = _bdot(xn_b, wm("w5pt")) + b5p                    # fc5 + avgpool1 -> [N, 2*pred_len]
    t = _ln(t, ln1w, ln1b)
    t = _bdot(t, wm("w6p")) + b6p                        # fc6 + avgpool2 -> [N, pred_len//2]
    t = _ln(t, ln2w, ln2b)
    t = _bdot(t, wm("w7t")) + b7                         # fc7 -> [N, pred_len]

    # ---- LSTM decoder (context vector repeated pred_len steps) ----
    ctx = jnp.concatenate([s_out, t], axis=1)            # [N, 2*pred_len]
    xp = _bdot(ctx, wm("wih")) + lstmb                   # input projection (time-constant)
    whh = wm("whh")                                      # bf16 [CTX, 4*CTX]
    h_t = jnp.zeros((N_ROWS, CTX), F32)
    c_t = jnp.zeros((N_ROWS, CTX), F32)
    pred = jnp.zeros((N_ROWS, PRED_LEN), F32) + bfc      # start from the fc bias
    lane = lax.broadcasted_iota(jnp.int32, (N_ROWS, PRED_LEN), 1)
    H = CTX
    for step in range(PRED_LEN):                         # static unroll, tiny trip count
        gates = xp + _bdot(h_t, whh)                     # PyTorch gate order: i, f, g, o
        i = jax.nn.sigmoid(gates[:, 0:H])
        f = jax.nn.sigmoid(gates[:, H:2 * H])
        g = jnp.tanh(gates[:, 2 * H:3 * H])
        o = jax.nn.sigmoid(gates[:, 3 * H:4 * H])
        c_t = f * c_t + i * g
        h_t = o * jnp.tanh(c_t)
        # output projection restricted to the diagonal channel of this row:
        proj = jnp.sum(h_t * wsel, axis=1, keepdims=True)
        pred = pred + jnp.where(lane == step, proj, 0.0)  # masked column placement

    # ---- RevIN 'denorm' ----
    pred = (pred - rb) * inv_rw
    out_ref[...] = pred * stdev + mean


def _vmem():
    return pl.BlockSpec(memory_space=pltpu.MemorySpace.VMEM)


# ----------------------------------------------------------------------------
# Deterministic parameter construction + host-side folding/packing (done once)
# ----------------------------------------------------------------------------
def init_params(key):
    def nrm(k, shape, scale=0.1):
        return scale * jax.random.normal(k, shape, dtype=F32)

    keys = iter(jax.random.split(key, 40))
    P, PL, L, N = PATCH_NUM, PATCH_LEN, SEQ_LEN, N_ROWS

    # ---- raw (PyTorch-layout) parameters ----
    revin_w = jnp.ones((C_IN,), F32)
    revin_b = jnp.zeros((C_IN,), F32)
    w1 = nrm(next(keys), (DIM, PL));      b1 = nrm(next(keys), (DIM,))      # fc1
    bn1_w = jnp.ones((P,), F32);          bn1_b = jnp.zeros((P,), F32)
    w_dw = nrm(next(keys), (P, PL));      b_dw = nrm(next(keys), (P,))      # conv1 (depthwise)
    bn2_w = jnp.ones((P,), F32);          bn2_b = jnp.zeros((P,), F32)
    w2 = nrm(next(keys), (PL, DIM));      b2 = nrm(next(keys), (PL,))       # fc2
    pw_w = nrm(next(keys), (P, P));       pw_b = nrm(next(keys), (P,))      # conv2 (pointwise)
    bn3_w = jnp.ones((P,), F32);          bn3_b = jnp.zeros((P,), F32)
    w3 = nrm(next(keys), (CTX, PP));      b3 = nrm(next(keys), (CTX,))      # fc3
    w4 = nrm(next(keys), (PRED_LEN, CTX)); b4 = nrm(next(keys), (PRED_LEN,))  # fc4
    w5 = nrm(next(keys), (PRED_LEN * 4, L)); b5 = nrm(next(keys), (PRED_LEN * 4,))  # fc5
    ln1_w = jnp.ones((PRED_LEN * 2,), F32); ln1_b = jnp.zeros((PRED_LEN * 2,), F32)
    w6 = nrm(next(keys), (PRED_LEN, PRED_LEN * 2)); b6 = nrm(next(keys), (PRED_LEN,))  # fc6
    ln2_w = jnp.ones((PRED_LEN // 2,), F32); ln2_b = jnp.zeros((PRED_LEN // 2,), F32)
    w7 = nrm(next(keys), (PRED_LEN, PRED_LEN // 2)); b7 = nrm(next(keys), (PRED_LEN,))  # fc7
    w_ih = nrm(next(keys), (NGATE, CTX))
    w_hh = nrm(next(keys), (NGATE, CTX))
    lstm_b = nrm(next(keys), (NGATE,))                                      # b_ih + b_hh folded
    w_fc = nrm(next(keys), (C_IN, CTX));  b_fc = nrm(next(keys), (C_IN,))   # decoder fc

    # ---- EMA as an upper-triangular [L, L] matrix: trend = xn @ ema_t ----
    s_idx = jnp.arange(L)[:, None]
    t_idx = jnp.arange(L)[None, :]
    diff = t_idx - s_idx
    factor = jnp.where(s_idx == 0, 1.0, ALPHA)
    ema_t = jnp.where(diff >= 0,
                      factor * (1.0 - ALPHA) ** jnp.maximum(diff, 0).astype(F32),
                      0.0).astype(F32)

    # ---- patching (ReplicationPad1d((0,stride)) + unfold) folded with block-diag fc1 ----
    pos = (jnp.arange(P)[:, None] * STRIDE + jnp.arange(PL)[None, :]).reshape(-1)
    src = jnp.minimum(pos, L - 1)                            # replication pad -> clamp to last
    g_patch = (jnp.arange(L)[:, None] == src[None, :]).astype(F32)        # [L, P*PL]
    w1_bd = jnp.kron(jnp.eye(P, dtype=F32), w1.T)                         # [P*PL, P*DIM]
    w_embed = g_patch @ w1_bd                                             # [L, P*DIM]
    b1_cols = jnp.tile(b1[None, :], (1, P))                               # [1, P*DIM]

    # ---- EMA folded into the first matmul of each stream ----
    wemb_s = (jnp.eye(L, dtype=F32) - ema_t) @ w_embed                    # seasonal stream
    # (trend stream folded below into w5p)

    # ---- per-column-group averaging matrices for training-mode BatchNorm1d ----
    pcol16 = jnp.kron(jnp.eye(P, dtype=F32), jnp.ones((DIM, DIM), F32)) / (N * DIM)
    pcol4 = jnp.kron(jnp.eye(P, dtype=F32), jnp.ones((PL, PL), F32)) / (N * PL)

    # ---- depthwise conv1 as mask-multiply + group-sum matmul ----
    dwmask_cols = jnp.tile(w_dw, (1, PL)).reshape(1, P * DIM)             # [1, P*DIM]
    g_dw = jnp.kron(jnp.eye(P, dtype=F32),
                    jnp.kron(jnp.eye(PL, dtype=F32), jnp.ones((PL, 1), F32)))  # [P*DIM, P*PL]
    bdw_cols = jnp.repeat(b_dw, PL)[None, :]

    # ---- residual fc2 as block-diagonal ----
    w2_bd = jnp.kron(jnp.eye(P, dtype=F32), w2.T)                         # [P*DIM, P*PL]
    b2_cols = jnp.tile(b2[None, :], (1, P))

    # ---- pointwise conv2 across patch channels ----
    k_pw = jnp.kron(pw_w.T, jnp.eye(PL, dtype=F32))                       # [P*PL, P*PL]
    pwb_cols = jnp.repeat(pw_b, PL)[None, :]

    # ---- per-patch BN scale/bias expanded to columns (hoisted broadcasts) ----
    bn1w_cols = jnp.repeat(bn1_w, DIM)[None, :]
    bn1b_cols = jnp.repeat(bn1_b, DIM)[None, :]
    bn2w_cols = jnp.repeat(bn2_w, PL)[None, :]
    bn2b_cols = jnp.repeat(bn2_b, PL)[None, :]
    bn3w_cols = jnp.repeat(bn3_w, PL)[None, :]
    bn3b_cols = jnp.repeat(bn3_b, PL)[None, :]

    # ---- trend stream: fold AvgPool1d(k=2) layers + EMA into the Linear weights ----
    pool1 = 0.5 * ((jnp.arange(PRED_LEN * 4)[:, None] // 2)
                   == jnp.arange(PRED_LEN * 2)[None, :]).astype(F32)
    pool2 = 0.5 * ((jnp.arange(PRED_LEN)[:, None] // 2)
                   == jnp.arange(PRED_LEN // 2)[None, :]).astype(F32)
    w5p_t = ema_t @ (w5.T @ pool1)                                        # [L, 2*pred_len]
    b5p = b5[None, :] @ pool1
    w6p = w6.T @ pool2
    b6p = b6[None, :] @ pool2

    # ---- decoder output projection restricted to the diagonal channel per row ----
    row_c = jnp.arange(N) % C_IN
    w_sel = w_fc[row_c]                                                   # [N, CTX]
    rowpack = jnp.stack([revin_w[row_c], revin_b[row_c], b_fc[row_c],
                         1.0 / (revin_w[row_c] + EPS_REVIN * EPS_REVIN)], axis=1)  # [N, 4]

    def pad_to(v, width):
        return jnp.pad(v, ((0, 0), (0, width - v.shape[1])))

    pack80 = jnp.concatenate([b1_cols, dwmask_cols, bn1w_cols, bn1b_cols,
                              pad_to(lstm_b[None, :], PD)], axis=0)       # [5, 80]
    pack20 = jnp.concatenate([bdw_cols, b2_cols, pwb_cols,
                              bn2w_cols, bn2b_cols, bn3w_cols, bn3b_cols], axis=0)  # [7, 20]
    packs = jnp.concatenate(
        [b3[None, :], b5p, ln1_w[None, :], ln1_b[None, :],
         pad_to(b4[None, :], CTX), pad_to(b7[None, :], CTX),
         pad_to(b6p, CTX), pad_to(ln2_w[None, :], CTX), pad_to(ln2_b[None, :], CTX)],
        axis=0)                                                           # [9, 16]

    # ---- pack everything into the two slabs ----
    w_mats = dict(wemb=wemb_s, gdw=g_dw, w2bd=w2_bd, kpw=k_pw, w3t=w3.T, w4t=w4.T,
                  w5pt=w5p_t, w6p=w6p, w7t=w7.T, wih=w_ih.T, whh=w_hh.T)
    v_mats = dict(pcol16=pcol16, pcol4=pcol4, pack80=pack80, pack20=pack20,
                  packs=packs, rowpack=rowpack, wsel=w_sel)
    slab_w = _pack_slab(W_LAYOUT, W_ROWS, w_mats, BF16)   # bf16 matmul weights
    slab_v = _pack_slab(V_LAYOUT, V_ROWS, v_mats, F32)    # f32 element-wise params
    return dict(slab_w=slab_w, slab_v=slab_v)


# ----------------------------------------------------------------------------
# Forward pass: one fused Pallas kernel (3 inputs, 1 output)
# ----------------------------------------------------------------------------
def xpatch_lstm_forward(x, p):
    Bb, L, C = x.shape
    # channel independence: [B, L, C] -> [B*C, L]  (fused into the custom-call operand)
    x_rows = jnp.transpose(x, (0, 2, 1)).reshape(Bb * C, L)

    out_rows = pl.pallas_call(
        fused_kernel,
        out_shape=jax.ShapeDtypeStruct((Bb * C, PRED_LEN), F32),
        in_specs=[_vmem(), _vmem(), _vmem()],
        out_specs=_vmem(),
        compiler_params=pltpu.CompilerParams(
            allow_input_fusion=[True, False, False]),
        # N=8 rows: single invocation, no grid.  If B*C ever scales to hundreds of rows,
        # add a row-block grid with dimension_semantics=("parallel",) — but training-mode
        # BatchNorm stats would then need a cross-block reduction to stay correct.
    )(x_rows, p["slab_w"], p["slab_v"])

    # [B*C, pred_len] -> [B, pred_len, C]
    return jnp.transpose(out_rows.reshape(Bb, C, PRED_LEN), (0, 2, 1))


if __name__ == "__main__":
    key = jax.random.PRNGKey(0)
    pkey, xkey = jax.random.split(key)
    params = init_params(pkey)
    x = jax.random.normal(xkey, (B, SEQ_LEN, C_IN), dtype=F32)

    fwd = jax.jit(xpatch_lstm_forward)
    y = fwd(x, params)
    jax.block_until_ready(y)
    assert y.shape == (B, PRED_LEN, C_IN), y.shape
    assert bool(jnp.all(jnp.isfinite(y)))
    print("KERNEL_OK")
</pallas_src>

<mosaic_0001>
module attributes {stable_mosaic.version = 11 : i64} {
  func.func @fused_kernel(%arg0: memref<8x16xf32, #tpu.memory_space<vmem>>, %arg1: memref<336x128xbf16, #tpu.memory_space<vmem>>, %arg2: memref<152x128xf32, #tpu.memory_space<vmem>>, %arg3: memref<8x8xf32, #tpu.memory_space<vmem>>) attributes {dimension_semantics = [], scalar_prefetch = 0 : i64, scratch_operands = 0 : i64, tpu.core_type = #tpu.core_type<tc>} {
    %c0 = arith.constant 0 : index
    %c0_0 = arith.constant 0 : index
    %0 = vector.load %arg0[%c0, %c0_0] : memref<8x16xf32, #tpu.memory_space<vmem>>, vector<8x16xf32>
    %c136 = arith.constant 136 : index
    %c0_1 = arith.constant 0 : index
    %1 = vector.load %arg2[%c136, %c0_1] : memref<152x128xf32, #tpu.memory_space<vmem>>, vector<8x4xf32>
    %2 = vector.extract_strided_slice %1 {offsets = [0, 0], sizes = [8, 1], strides = [1, 1]} : vector<8x4xf32> to vector<8x1xf32>
    %3 = vector.extract_strided_slice %1 {offsets = [0, 1], sizes = [8, 1], strides = [1, 1]} : vector<8x4xf32> to vector<8x1xf32>
    %4 = vector.extract_strided_slice %1 {offsets = [0, 2], sizes = [8, 1], strides = [1, 1]} : vector<8x4xf32> to vector<8x1xf32>
    %5 = vector.extract_strided_slice %1 {offsets = [0, 3], sizes = [8, 1], strides = [1, 1]} : vector<8x4xf32> to vector<8x1xf32>
    %cst = arith.constant dense<0.000000e+00> : vector<8xf32>
    %6 = vector.multi_reduction <add>, %0, %cst [1] : vector<8x16xf32> to vector<8xf32>
    %7 = vector.shape_cast %6 : vector<8xf32> to vector<8x1xf32>
    %cst_2 = arith.constant 1.600000e+01 : f32
    %8 = vector.broadcast %cst_2 : f32 to vector<8x1xf32>
    %9 = arith.divf %7, %8 : vector<8x1xf32>
    %10 = vector.broadcast %9 : vector<8x1xf32> to vector<8x16xf32>
    %11 = arith.subf %0, %10 : vector<8x16xf32>
    %12 = arith.mulf %11, %11 : vector<8x16xf32>
    %cst_3 = arith.constant dense<0.000000e+00> : vector<8xf32>
    %13 = vector.multi_reduction <add>, %12, %cst_3 [1] : vector<8x16xf32> to vector<8xf32>
    %14 = vector.shape_cast %13 : vector<8xf32> to vector<8x1xf32>
    %cst_4 = arith.constant 1.600000e+01 : f32
    %15 = vector.broadcast %cst_4 : f32 to vector<8x1xf32>
    %16 = arith.divf %14, %15 : vector<8x1xf32>
    %cst_5 = arith.constant 9.99999974E-6 : f32
    %17 = vector.broadcast %cst_5 : f32 to vector<8x1xf32>
    %18 = arith.addf %16, %17 : vector<8x1xf32>
    %19 = math.rsqrt %18 : vector<8x1xf32>
    %cst_6 = arith.constant 9.99999974E-6 : f32
    %20 = vector.broadcast %cst_6 : f32 to vector<8x1xf32>
    %21 = arith.addf %16, %20 : vector<8x1xf32>
    %22 = arith.mulf %21, %19 : vector<8x1xf32>
    %23 = vector.broadcast %19 : vector<8x1xf32> to vector<8x16xf32>
    %24 = arith.mulf %11, %23 : vector<8x16xf32>
    %25 = vector.broadcast %2 : vector<8x1xf32> to vector<8x16xf32>
    %26 = arith.mulf %24, %25 : vector<8x16xf32>
    %27 = vector.broadcast %3 : vector<8x1xf32> to vector<8x16xf32>
    %28 = arith.addf %26, %27 : vector<8x16xf32>
    %29 = arith.truncf %28 : vector<8x16xf32> to vector<8x16xbf16>
    %c104 = arith.constant 104 : index
    %c0_7 = arith.constant 0 : index
    %30 = vector.load %arg2[%c104, %c0_7] : memref<152x128xf32, #tpu.memory_space<vmem>>, vector<5x80xf32>
    %31 = vector.extract_strided_slice %30 {offsets = [0, 0], sizes = [1, 80], strides = [1, 1]} : vector<5x80xf32> to vector<1x80xf32>
    %32 = vector.extract_strided_slice %30 {offsets = [1, 0], sizes = [1, 80], strides = [1, 1]} : vector<5x80xf32> to vector<1x80xf32>
    %33 = vector.extract_strided_slice %30 {offsets = [2, 0], sizes = [1, 80], strides = [1, 1]} : vector<5x80xf32> to vector<1x80xf32>
    %34 = vector.extract_strided_slice %30 {offsets = [3, 0], sizes = [1, 80], strides = [1, 1]} : vector<5x80xf32> to vector<1x80xf32>
    %35 = vector.extract_strided_slice %30 {offsets = [4, 0], sizes = [1, 64], strides = [1, 1]} : vector<5x80xf32> to vector<1x64xf32>
    %c112 = arith.constant 112 : index
    %c0_8 = arith.constant 0 : index
    %36 = vector.load %arg2[%c112, %c0_8] : memref<152x128xf32, #tpu.memory_space<vmem>>, vector<7x20xf32>
    %37 = vector.extract_strided_slice %36 {offsets = [0, 0], sizes = [1, 20], strides = [1, 1]} : vector<7x20xf32> to vector<1x20xf32>
    %38 = vector.extract_strided_slice %36 {offsets = [1, 0], sizes = [1, 20], strides = [1, 1]} : vector<7x20xf32> to vector<1x20xf32>
    %39 = vector.extract_strided_slice %36 {offsets = [2, 0], sizes = [1, 20], strides = [1, 1]} : vector<7x20xf32> to vector<1x20xf32>
    %40 = vector.extract_strided_slice %36 {offsets = [3, 0], sizes = [1, 20], strides = [1, 1]} : vector<7x20xf32> to vector<1x20xf32>
    %41 = vector.extract_strided_slice %36 {offsets = [4, 0], sizes = [1, 20], strides = [1, 1]} : vector<7x20xf32> to vector<1x20xf32>
    %42 = vector.extract_strided_slice %36 {offsets = [5, 0], sizes = [1, 20], strides = [1, 1]} : vector<7x20xf32> to vector<1x20xf32>
    %43 = vector.extract_strided_slice %36 {offsets = [6, 0], sizes = [1, 20], strides = [1, 1]} : vector<7x20xf32> to vector<1x20xf32>
    %c120 = arith.constant 120 : index
    %c0_9 = arith.constant 0 : index
    %44 = vector.load %arg2[%c120, %c0_9] : memref<152x128xf32, #tpu.memory_space<vmem>>, vector<9x16xf32>
    %45 = vector.extract_strided_slice %44 {offsets = [0, 0], sizes = [1, 16], strides = [1, 1]} : vector<9x16xf32> to vector<1x16xf32>
    %46 = vector.extract_strided_slice %44 {offsets = [1, 0], sizes = [1, 16], strides = [1, 1]} : vector<9x16xf32> to vector<1x16xf32>
    %47 = vector.extract_strided_slice %44 {offsets = [2, 0], sizes = [1, 16], strides = [1, 1]} : vector<9x16xf32> to vector<1x16xf32>
    %48 = vector.extract_strided_slice %44 {offsets = [3, 0], sizes = [1, 16], strides = [1, 1]} : vector<9x16xf32> to vector<1x16xf32>
    %49 = vector.extract_strided_slice %44 {offsets = [4, 0], sizes = [1, 8], strides = [1, 1]} : vector<9x16xf32> to vector<1x8xf32>
    %50 = vector.extract_strided_slice %44 {offsets = [5, 0], sizes = [1, 8], strides = [1, 1]} : vector<9x16xf32> to vector<1x8xf32>
    %51 = vector.extract_strided_slice %44 {offsets = [6, 0], sizes = [1, 4], strides = [1, 1]} : vector<9x16xf32> to vector<1x4xf32>
    %52 = vector.extract_strided_slice %44 {offsets = [7, 0], sizes = [1, 4], strides = [1, 1]} : vector<9x16xf32> to vector<1x4xf32>
    %53 = vector.extract_strided_slice %44 {offsets = [8, 0], sizes = [1, 4], strides = [1, 1]} : vector<9x16xf32> to vector<1x4xf32>
    %c0_10 = arith.constant 0 : index
    %c0_11 = arith.constant 0 : index
    %54 = vector.load %arg2[%c0_10, %c0_11] : memref<152x128xf32, #tpu.memory_space<vmem>>, vector<80x80xf32>
    %c80 = arith.constant 80 : index
    %c0_12 = arith.constant 0 : index
    %55 = vector.load %arg2[%c80, %c0_12] : memref<152x128xf32, #tpu.memory_space<vmem>>, vector<20x20xf32>
    %c144 = arith.constant 144 : index
    %c0_13 = arith.constant 0 : index
    %56 = vector.load %arg2[%c144, %c0_13] : memref<152x128xf32, #tpu.memory_space<vmem>>, vector<8x16xf32>
    %c0_14 = arith.constant 0 : index
    %c0_15 = arith.constant 0 : index
    %57 = vector.load %arg1[%c0_14, %c0_15] : memref<336x128xbf16, #tpu.memory_space<vmem>>, vector<16x80xbf16>
    %cst_16 = arith.constant dense<0.000000e+00> : vector<8x80xf32>
    %58 = tpu.matmul %29, %57, %cst_16 {dimension_numbers = #tpu.dot_dimension_numbers<[1], [0], [0], [1], [0, 0, 1, 1], [], []>} : vector<8x16xbf16>, vector<16x80xbf16>, vector<8x80xf32> -> vector<8x80xf32>
    %59 = vector.broadcast %31 : vector<1x80xf32> to vector<8x80xf32>
    %60 = arith.addf %58, %59 : vector<8x80xf32>
    %cst_17 = arith.constant 5.000000e-01 : f32
    %61 = vector.broadcast %cst_17 : f32 to vector<8x80xf32>
    %62 = arith.mulf %61, %60 : vector<8x80xf32>
    %cst_18 = arith.constant 0.707106769 : f32
    %63 = vector.broadcast %cst_18 : f32 to vector<8x80xf32>
    %64 = arith.mulf %60, %63 : vector<8x80xf32>
    %65 = math.erf %64 : vector<8x80xf32>
    %cst_19 = arith.constant 1.000000e+00 : f32
    %66 = vector.broadcast %cst_19 : f32 to vector<8x80xf32>
    %67 = arith.addf %66, %65 : vector<8x80xf32>
    %68 = arith.mulf %62, %67 : vector<8x80xf32>
    %cst_20 = arith.constant dense<0.000000e+00> : vector<80xf32>
    %69 = vector.multi_reduction <add>, %68, %cst_20 [0] : vector<8x80xf32> to vector<80xf32>
    %70 = vector.shape_cast %69 : vector<80xf32> to vector<1x80xf32>
    %71 = arith.mulf %68, %68 : vector<8x80xf32>
    %cst_21 = arith.constant dense<0.000000e+00> : vector<80xf32>
    %72 = vector.multi_reduction <add>, %71, %cst_21 [0] : vector<8x80xf32> to vector<80xf32>
    %73 = vector.shape_cast %72 : vector<80xf32> to vector<1x80xf32>
    %74 = tpu.concatenate %70, %73 in 0 : vector<1x80xf32>, vector<1x80xf32> -> vector<2x80xf32>
    %cst_22 = arith.constant dense<0.000000e+00> : vector<2x80xf32>
    %75 = tpu.matmul %74, %54, %cst_22 {dimension_numbers = #tpu.dot_dimension_numbers<[1], [0], [0], [1], [0, 0, 1, 1], [], []>} : vector<2x80xf32>, vector<80x80xf32>, vector<2x80xf32> -> vector<2x80xf32>
    %76 = vector.extract_strided_slice %75 {offsets = [0, 0], sizes = [1, 80], strides = [1, 1]} : vector<2x80xf32> to vector<1x80xf32>
    %77 = vector.extract_strided_slice %75 {offsets = [1, 0], sizes = [1, 80], strides = [1, 1]} : vector<2x80xf32> to vector<1x80xf32>
    %78 = arith.mulf %76, %76 : vector<1x80xf32>
    %79 = arith.subf %77, %78 : vector<1x80xf32>
    %80 = vector.broadcast %76 : vector<1x80xf32> to vector<8x80xf32>
    %81 = arith.subf %68, %80 : vector<8x80xf32>
    %cst_23 = arith.constant 9.99999974E-6 : f32
    %82 = vector.broadcast %cst_23 : f32 to vector<1x80xf32>
    %83 = arith.addf %79, %82 : vector<1x80xf32>
    %84 = math.rsqrt %83 : vector<1x80xf32>
    %85 = vector.broadcast %84 : vector<1x80xf32> to vector<8x80xf32>
    %86 = arith.mulf %81, %85 : vector<8x80xf32>
    %87 = vector.broadcast %33 : vector<1x80xf32> to vector<8x80xf32>
    %88 = arith.mulf %86, %87 : vector<8x80xf32>
    %89 = vector.broadcast %34 : vector<1x80xf32> to vector<8x80xf32>
    %90 = arith.addf %88, %89 : vector<8x80xf32>
    %91 = vector.broadcast %32 : vector<1x80xf32> to vector<8x80xf32>
    %92 = arith.mulf %90, %91 : vector<8x80xf32>
    %c16 = arith.constant 16 : index
    %c0_24 = arith.constant 0 : index
    %93 = vector.load %arg1[%c16, %c0_24] : memref<336x128xbf16, #tpu.memory_space<vmem>>, vector<80x20xbf16>
    %94 = arith.truncf %92 : vector<8x80xf32> to vector<8x80xbf16>
    %cst_25 = arith.constant dense<0.000000e+00> : vector<8x20xf32>
    %95 = tpu.matmul %94, %93, %cst_25 {dimension_numbers = #tpu.dot_dimension_numbers<[1], [0], [0], [1], [0, 0, 1, 1], [], []>} : vector<8x80xbf16>, vector<80x20xbf16>, vector<8x20xf32> -> vector<8x20xf32>
    %96 = vector.broadcast %37 : vector<1x20xf32> to vector<8x20xf32>
    %97 = arith.addf %95, %96 : vector<8x20xf32>
    %cst_26 = arith.constant 5.000000e-01 : f32
    %98 = vector.broadcast %cst_26 : f32 to vector<8x20xf32>
    %99 = arith.mulf %98, %97 : vector<8x20xf32>
    %cst_27 = arith.constant 0.707106769 : f32
    %100 = vector.broadcast %cst_27 : f32 to vector<8x20xf32>
    %101 = arith.mulf %97, %100 : vector<8x20xf32>
    %102 = math.erf %101 : vector<8x20xf32>
    %cst_28 = arith.constant 1.000000e+00 : f32
    %103 = vector.broadcast %cst_28 : f32 to vector<8x20xf32>
    %104 = arith.addf %103, %102 : vector<8x20xf32>
    %105 = arith.mulf %99, %104 : vector<8x20xf32>
    %cst_29 = arith.constant dense<0.000000e+00> : vector<20xf32>
    %106 = vector.multi_reduction <add>, %105, %cst_29 [0] : vector<8x20xf32> to vector<20xf32>
    %107 = vector.shape_cast %106 : vector<20xf32> to vector<1x20xf32>
    %108 = arith.mulf %105, %105 : vector<8x20xf32>
    %cst_30 = arith.constant dense<0.000000e+00> : vector<20xf32>
    %109 = vector.multi_reduction <add>, %108, %cst_30 [0] : vector<8x20xf32> to vector<20xf32>
    %110 = vector.shape_cast %109 : vector<20xf32> to vector<1x20xf32>
    %111 = tpu.concatenate %107, %110 in 0 : vector<1x20xf32>, vector<1x20xf32> -> vector<2x20xf32>
    %cst_31 = arith.constant dense<0.000000e+00> : vector<2x20xf32>
    %112 = tpu.matmul %111, %55, %cst_31 {dimension_numbers = #tpu.dot_dimension_numbers<[1], [0], [0], [1], [0, 0, 1, 1], [], []>} : vector<2x20xf32>, vector<20x20xf32>, vector<2x20xf32> -> vector<2x20xf32>
    %113 = vector.extract_strided_slice %112 {offsets = [0, 0], sizes = [1, 20], strides = [1, 1]} : vector<2x20xf32> to vector<1x20xf32>
    %114 = vector.extract_strided_slice %112 {offsets = [1, 0], sizes = [1, 20], strides = [1, 1]} : vector<2x20xf32> to vector<1x20xf32>
    %115 = arith.mulf %113, %113 : vector<1x20xf32>
    %116 = arith.subf %114, %115 : vector<1x20xf32>
    %117 = vector.broadcast %113 : vector<1x20xf32> to vector<8x20xf32>
    %118 = arith.subf %105, %117 : vector<8x20xf32>
    %cst_32 = arith.constant 9.99999974E-6 : f32
    %119 = vector.broadcast %cst_32 : f32 to vector<1x20xf32>
    %120 = arith.addf %116, %119 : vector<1x20xf32>
    %121 = math.rsqrt %120 : vector<1x20xf32>
    %122 = vector.broadcast %121 : vector<1x20xf32> to vector<8x20xf32>
    %123 = arith.mulf %118, %122 : vector<8x20xf32>
    %124 = vector.broadcast %40 : vector<1x20xf32> to vector<8x20xf32>
    %125 = arith.mulf %123, %124 : vector<8x20xf32>
    %126 = vector.broadcast %41 : vector<1x20xf32> to vector<8x20xf32>
    %127 = arith.addf %125, %126 : vector<8x20xf32>
    %c96 = arith.constant 96 : index
    %c0_33 = arith.constant 0 : index
    %128 = vector.load %arg1[%c96, %c0_33] : memref<336x128xbf16, #tpu.memory_space<vmem>>, vector<80x20xbf16>
    %129 = arith.truncf %90 : vector<8x80xf32> to vector<8x80xbf16>
    %cst_34 = arith.constant dense<0.000000e+00> : vector<8x20xf32>
    %130 = tpu.matmul %129, %128, %cst_34 {dimension_numbers = #tpu.dot_dimension_numbers<[1], [0], [0], [1], [0, 0, 1, 1], [], []>} : vector<8x80xbf16>, vector<80x20xbf16>, vector<8x20xf32> -> vector<8x20xf32>
    %131 = arith.addf %127, %130 : vector<8x20xf32>
    %132 = vector.broadcast %38 : vector<1x20xf32> to vector<8x20xf32>
    %133 = arith.addf %131, %132 : vector<8x20xf32>
    %c176 = arith.constant 176 : index
    %c0_35 = arith.constant 0 : index
    %134 = vector.load %arg1[%c176, %c0_35] : memref<336x128xbf16, #tpu.memory_space<vmem>>, vector<20x20xbf16>
    %135 = arith.truncf %133 : vector<8x20xf32> to vector<8x20xbf16>
    %cst_36 = arith.constant dense<0.000000e+00> : vector<8x20xf32>
    %136 = tpu.matmul %135, %134, %cst_36 {dimension_numbers = #tpu.dot_dimension_numbers<[1], [0], [0], [1], [0, 0, 1, 1], [], []>} : vector<8x20xbf16>, vector<20x20xbf16>, vector<8x20xf32> -> vector<8x20xf32>
    %137 = vector.broadcast %39 : vector<1x20xf32> to vector<8x20xf32>
    %138 = arith.addf %136, %137 : vector<8x20xf32>
    %cst_37 = arith.constant 5.000000e-01 : f32
    %139 = vector.broadcast %cst_37 : f32 to vector<8x20xf32>
    %140 = arith.mulf %139, %138 : vector<8x20xf32>
    %cst_38 = arith.constant 0.707106769 : f32
    %141 = vector.broadcast %cst_38 : f32 to vector<8x20xf32>
    %142 = arith.mulf %138, %141 : vector<8x20xf32>
    %143 = math.erf %142 : vector<8x20xf32>
    %cst_39 = arith.constant 1.000000e+00 : f32
    %144 = vector.broadcast %cst_39 : f32 to vector<8x20xf32>
    %145 = arith.addf %144, %143 : vector<8x20xf32>
    %146 = arith.mulf %140, %145 : vector<8x20xf32>
    %cst_40 = arith.constant dense<0.000000e+00> : vector<20xf32>
    %147 = vector.multi_reduction <add>, %146, %cst_40 [0] : vector<8x20xf32> to vector<20xf32>
    %148 = vector.shape_cast %147 : vector<20xf32> to vector<1x20xf32>
    %149 = arith.mulf %146, %146 : vector<8x20xf32>
    %cst_41 = arith.constant dense<0.000000e+00> : vector<20xf32>
    %150 = vector.multi_reduction <add>, %149, %cst_41 [0] : vector<8x20xf32> to vector<20xf32>
    %151 = vector.shape_cast %150 : vector<20xf32> to vector<1x20xf32>
    %152 = tpu.concatenate %148, %151 in 0 : vector<1x20xf32>, vector<1x20xf32> -> vector<2x20xf32>
    %cst_42 = arith.constant dense<0.000000e+00> : vector<2x20xf32>
    %153 = tpu.matmul %152, %55, %cst_42 {dimension_numbers = #tpu.dot_dimension_numbers<[1], [0], [0], [1], [0, 0, 1, 1], [], []>} : vector<2x20xf32>, vector<20x20xf32>, vector<2x20xf32> -> vector<2x20xf32>
    %154 = vector.extract_strided_slice %153 {offsets = [0, 0], sizes = [1, 20], strides = [1, 1]} : vector<2x20xf32> to vector<1x20xf32>
    %155 = vector.extract_strided_slice %153 {offsets = [1, 0], sizes = [1, 20], strides = [1, 1]} : vector<2x20xf32> to vector<1x20xf32>
    %156 = arith.mulf %154, %154 : vector<1x20xf32>
    %157 = arith.subf %155, %156 : vector<1x20xf32>
    %158 = vector.broadcast %154 : vector<1x20xf32> to vector<8x20xf32>
    %159 = arith.subf %146, %158 : vector<8x20xf32>
    %cst_43 = arith.constant 9.99999974E-6 : f32
    %160 = vector.broadcast %cst_43 : f32 to vector<1x20xf32>
    %161 = arith.addf %157, %160 : vector<1x20xf32>
    %162 = math.rsqrt %161 : vector<1x20xf32>
    %163 = vector.broadcast %162 : vector<1x20xf32> to vector<8x20xf32>
    %164 = arith.mulf %159, %163 : vector<8x20xf32>
    %165 = vector.broadcast %42 : vector<1x20xf32> to vector<8x20xf32>
    %166 = arith.mulf %164, %165 : vector<8x20xf32>
    %167 = vector.broadcast %43 : vector<1x20xf32> to vector<8x20xf32>
    %168 = arith.addf %166, %167 : vector<8x20xf32>
    %c208 = arith.constant 208 : index
    %c0_44 = arith.constant 0 : index
    %169 = vector.load %arg1[%c208, %c0_44] : memref<336x128xbf16, #tpu.memory_space<vmem>>, vector<20x16xbf16>
    %170 = arith.truncf %168 : vector<8x20xf32> to vector<8x20xbf16>
    %cst_45 = arith.constant dense<0.000000e+00> : vector<8x16xf32>
    %171 = tpu.matmul %170, %169, %cst_45 {dimension_numbers = #tpu.dot_dimension_numbers<[1], [0], [0], [1], [0, 0, 1, 1], [], []>} : vector<8x20xbf16>, vector<20x16xbf16>, vector<8x16xf32> -> vector<8x16xf32>
    %172 = vector.broadcast %45 : vector<1x16xf32> to vector<8x16xf32>
    %173 = arith.addf %171, %172 : vector<8x16xf32>
    %cst_46 = arith.constant 5.000000e-01 : f32
    %174 = vector.broadcast %cst_46 : f32 to vector<8x16xf32>
    %175 = arith.mulf %174, %173 : vector<8x16xf32>
    %cst_47 = arith.constant 0.707106769 : f32
    %176 = vector.broadcast %cst_47 : f32 to vector<8x16xf32>
    %177 = arith.mulf %173, %176 : vector<8x16xf32>
    %178 = math.erf %177 : vector<8x16xf32>
    %cst_48 = arith.constant 1.000000e+00 : f32
    %179 = vector.broadcast %cst_48 : f32 to vector<8x16xf32>
    %180 = arith.addf %179, %178 : vector<8x16xf32>
    %181 = arith.mulf %175, %180 : vector<8x16xf32>
    %c240 = arith.constant 240 : index
    %c0_49 = arith.constant 0 : index
    %182 = vector.load %arg1[%c240, %c0_49] : memref<336x128xbf16, #tpu.memory_space<vmem>>, vector<16x8xbf16>
    %183 = arith.truncf %181 : vector<8x16xf32> to vector<8x16xbf16>
    %cst_50 = arith.constant dense<0.000000e+00> : vector<8x8xf32>
    %184 = tpu.matmul %183, %182, %cst_50 {dimension_numbers = #tpu.dot_dimension_numbers<[1], [0], [0], [1], [0, 0, 1, 1], [], []>} : vector<8x16xbf16>, vector<16x8xbf16>, vector<8x8xf32> -> vector<8x8xf32>
    %185 = vector.broadcast %49 : vector<1x8xf32> to vector<8x8xf32>
    %186 = arith.addf %184, %185 : vector<8x8xf32>
    %c256 = arith.constant 256 : index
    %c0_51 = arith.constant 0 : index
    %187 = vector.load %arg1[%c256, %c0_51] : memref<336x128xbf16, #tpu.memory_space<vmem>>, vector<16x16xbf16>
    %cst_52 = arith.constant dense<0.000000e+00> : vector<8x16xf32>
    %188 = tpu.matmul %29, %187, %cst_52 {dimension_numbers = #tpu.dot_dimension_numbers<[1], [0], [0], [1], [0, 0, 1, 1], [], []>} : vector<8x16xbf16>, vector<16x16xbf16>, vector<8x16xf32> -> vector<8x16xf32>
    %189 = vector.broadcast %46 : vector<1x16xf32> to vector<8x16xf32>
    %190 = arith.addf %188, %189 : vector<8x16xf32>
    %cst_53 = arith.constant dense<0.000000e+00> : vector<8xf32>
    %191 = vector.multi_reduction <add>, %190, %cst_53 [1] : vector<8x16xf32> to vector<8xf32>
    %192 = vector.shape_cast %191 : vector<8xf32> to vector<8x1xf32>
    %cst_54 = arith.constant 1.600000e+01 : f32
    %193 = vector.broadcast %cst_54 : f32 to vector<8x1xf32>
    %194 = arith.divf %192, %193 : vector<8x1xf32>
    %195 = vector.broadcast %194 : vector<8x1xf32> to vector<8x16xf32>
    %196 = arith.subf %190, %195 : vector<8x16xf32>
    %197 = arith.mulf %196, %196 : vector<8x16xf32>
    %cst_55 = arith.constant dense<0.000000e+00> : vector<8xf32>
    %198 = vector.multi_reduction <add>, %197, %cst_55 [1] : vector<8x16xf32> to vector<8xf32>
    %199 = vector.shape_cast %198 : vector<8xf32> to vector<8x1xf32>
    %cst_56 = arith.constant 1.600000e+01 : f32
    %200 = vector.broadcast %cst_56 : f32 to vector<8x1xf32>
    %201 = arith.divf %199, %200 : vector<8x1xf32>
    %cst_57 = arith.constant 9.99999974E-6 : f32
    %202 = vector.broadcast %cst_57 : f32 to vector<8x1xf32>
    %203 = arith.addf %201, %202 : vector<8x1xf32>
    %204 = math.rsqrt %203 : vector<8x1xf32>
    %205 = vector.broadcast %204 : vector<8x1xf32> to vector<8x16xf32>
    %206 = arith.mulf %196, %205 : vector<8x16xf32>
    %207 = vector.broadcast %47 : vector<1x16xf32> to vector<8x16xf32>
    %208 = arith.mulf %206, %207 : vector<8x16xf32>
    %209 = vector.broadcast %48 : vector<1x16xf32> to vector<8x16xf32>
    %210 = arith.addf %208, %209 : vector<8x16xf32>
    %c272 = arith.constant 272 : index
    %c0_58 = arith.constant 0 : index
    %211 = vector.load %arg1[%c272, %c0_58] : memref<336x128xbf16, #tpu.memory_space<vmem>>, vector<16x4xbf16>
    %212 = arith.truncf %210 : vector<8x16xf32> to vector<8x16xbf16>
    %cst_59 = arith.constant dense<0.000000e+00> : vector<8x4xf32>
    %213 = tpu.matmul %212, %211, %cst_59 {dimension_numbers = #tpu.dot_dimension_numbers<[1], [0], [0], [1], [0, 0, 1, 1], [], []>} : vector<8x16xbf16>, vector<16x4xbf16>, vector<8x4xf32> -> vector<8x4xf32>
    %214 = vector.broadcast %51 : vector<1x4xf32> to vector<8x4xf32>
    %215 = arith.addf %213, %214 : vector<8x4xf32>
    %cst_60 = arith.constant dense<0.000000e+00> : vector<8xf32>
    %216 = vector.multi_reduction <add>, %215, %cst_60 [1] : vector<8x4xf32> to vector<8xf32>
    %217 = vector.shape_cast %216 : vector<8xf32> to vector<8x1xf32>
    %cst_61 = arith.constant 4.000000e+00 : f32
    %218 = vector.broadcast %cst_61 : f32 to vector<8x1xf32>
    %219 = arith.divf %217, %218 : vector<8x1xf32>
    %220 = vector.broadcast %219 : vector<8x1xf32> to vector<8x4xf32>
    %221 = arith.subf %215, %220 : vector<8x4xf32>
    %222 = arith.mulf %221, %221 : vector<8x4xf32>
    %cst_62 = arith.constant dense<0.000000e+00> : vector<8xf32>
    %223 = vector.multi_reduction <add>, %222, %cst_62 [1] : vector<8x4xf32> to vector<8xf32>
    %224 = vector.shape_cast %223 : vector<8xf32> to vector<8x1xf32>
    %cst_63 = arith.constant 4.000000e+00 : f32
    %225 = vector.broadcast %cst_63 : f32 to vector<8x1xf32>
    %226 = arith.divf %224, %225 : vector<8x1xf32>
    %cst_64 = arith.constant 9.99999974E-6 : f32
    %227 = vector.broadcast %cst_64 : f32 to vector<8x1xf32>
    %228 = arith.addf %226, %227 : vector<8x1xf32>
    %229 = math.rsqrt %228 : vector<8x1xf32>
    %230 = vector.broadcast %229 : vector<8x1xf32> to vector<8x4xf32>
    %231 = arith.mulf %221, %230 : vector<8x4xf32>
    %232 = vector.broadcast %52 : vector<1x4xf32> to vector<8x4xf32>
    %233 = arith.mulf %231, %232 : vector<8x4xf32>
    %234 = vector.broadcast %53 : vector<1x4xf32> to vector<8x4xf32>
    %235 = arith.addf %233, %234 : vector<8x4xf32>
    %c288 = arith.constant 288 : index
    %c0_65 = arith.constant 0 : index
    %236 = vector.load %arg1[%c288, %c0_65] : memref<336x128xbf16, #tpu.memory_space<vmem>>, vector<4x8xbf16>
    %237 = arith.truncf %235 : vector<8x4xf32> to vector<8x4xbf16>
    %cst_66 = arith.constant dense<0.000000e+00> : vector<8x8xf32>
    %238 = tpu.matmul %237, %236, %cst_66 {dimension_numbers = #tpu.dot_dimension_numbers<[1], [0], [0], [1], [0, 0, 1, 1], [], []>} : vector<8x4xbf16>, vector<4x8xbf16>, vector<8x8xf32> -> vector<8x8xf32>
    %239 = vector.broadcast %50 : vector<1x8xf32> to vector<8x8xf32>
    %240 = arith.addf %238, %239 : vector<8x8xf32>
    %241 = tpu.concatenate %186, %240 in 1 : vector<8x8xf32>, vector<8x8xf32> -> vector<8x16xf32>
    %c304 = arith.constant 304 : index
    %c0_67 = arith.constant 0 : index
    %242 = vector.load %arg1[%c304, %c0_67] : memref<336x128xbf16, #tpu.memory_space<vmem>>, vector<16x64xbf16>
    %243 = arith.truncf %241 : vector<8x16xf32> to vector<8x16xbf16>
    %cst_68 = arith.constant dense<0.000000e+00> : vector<8x64xf32>
    %244 = tpu.matmul %243, %242, %cst_68 {dimension_numbers = #tpu.dot_dimension_numbers<[1], [0], [0], [1], [0, 0, 1, 1], [], []>} : vector<8x16xbf16>, vector<16x64xbf16>, vector<8x64xf32> -> vector<8x64xf32>
    %245 = vector.broadcast %35 : vector<1x64xf32> to vector<8x64xf32>
    %246 = arith.addf %244, %245 : vector<8x64xf32>
    %c320 = arith.constant 320 : index
    %c0_69 = arith.constant 0 : index
    %247 = vector.load %arg1[%c320, %c0_69] : memref<336x128xbf16, #tpu.memory_space<vmem>>, vector<16x64xbf16>
    %cst_70 = arith.constant 0.000000e+00 : f32
    %248 = vector.broadcast %cst_70 : f32 to vector<8x16xf32>
    %cst_71 = arith.constant 0.000000e+00 : f32
    %249 = vector.broadcast %cst_71 : f32 to vector<8x16xf32>
    %cst_72 = arith.constant 0.000000e+00 : f32
    %250 = vector.broadcast %cst_72 : f32 to vector<8x8xf32>
    %251 = vector.broadcast %4 : vector<8x1xf32> to vector<8x8xf32>
    %252 = arith.addf %250, %251 : vector<8x8xf32>
    %253 = tpu.iota {dimensions = array<i32: 1>} : vector<8x8xi32>
    %254 = arith.truncf %248 : vector<8x16xf32> to vector<8x16xbf16>
    %cst_73 = arith.constant dense<0.000000e+00> : vector<8x64xf32>
    %255 = tpu.matmul %254, %247, %cst_73 {dimension_numbers = #tpu.dot_dimension_numbers<[1], [0], [0], [1], [0, 0, 1, 1], [], []>} : vector<8x16xbf16>, vector<16x64xbf16>, vector<8x64xf32> -> vector<8x64xf32>
    %256 = arith.addf %246, %255 : vector<8x64xf32>
    %257 = vector.extract_strided_slice %256 {offsets = [0, 0], sizes = [8, 16], strides = [1, 1]} : vector<8x64xf32> to vector<8x16xf32>
    %258 = arith.negf %257 : vector<8x16xf32>
    %259 = math.exp %258 : vector<8x16xf32>
    %cst_74 = arith.constant 1.000000e+00 : f32
    %260 = vector.broadcast %cst_74 : f32 to vector<8x16xf32>
    %261 = arith.addf %260, %259 : vector<8x16xf32>
    %262 = arith.divf %260, %261 : vector<8x16xf32>
    %263 = vector.extract_strided_slice %256 {offsets = [0, 16], sizes = [8, 16], strides = [1, 1]} : vector<8x64xf32> to vector<8x16xf32>
    %264 = arith.negf %263 : vector<8x16xf32>
    %265 = math.exp %264 : vector<8x16xf32>
    %cst_75 = arith.constant 1.000000e+00 : f32
    %266 = vector.broadcast %cst_75 : f32 to vector<8x16xf32>
    %267 = arith.addf %266, %265 : vector<8x16xf32>
    %268 = arith.divf %266, %267 : vector<8x16xf32>
    %269 = vector.extract_strided_slice %256 {offsets = [0, 32], sizes = [8, 16], strides = [1, 1]} : vector<8x64xf32> to vector<8x16xf32>
    %270 = math.tanh %269 : vector<8x16xf32>
    %271 = vector.extract_strided_slice %256 {offsets = [0, 48], sizes = [8, 16], strides = [1, 1]} : vector<8x64xf32> to vector<8x16xf32>
    %272 = arith.negf %271 : vector<8x16xf32>
    %273 = math.exp %272 : vector<8x16xf32>
    %cst_76 = arith.constant 1.000000e+00 : f32
    %274 = vector.broadcast %cst_76 : f32 to vector<8x16xf32>
    %275 = arith.addf %274, %273 : vector<8x16xf32>
    %276 = arith.divf %274, %275 : vector<8x16xf32>
    %277 = arith.mulf %268, %249 : vector<8x16xf32>
    %278 = arith.mulf %262, %270 : vector<8x16xf32>
    %279 = arith.addf %277, %278 : vector<8x16xf32>
    %280 = math.tanh %279 : vector<8x16xf32>
    %281 = arith.mulf %276, %280 : vector<8x16xf32>
    %282 = arith.mulf %281, %56 : vector<8x16xf32>
    %cst_77 = arith.constant dense<0.000000e+00> : vector<8xf32>
    %283 = vector.multi_reduction <add>, %282, %cst_77 [1] : vector<8x16xf32> to vector<8xf32>
    %284 = vector.shape_cast %283 : vector<8xf32> to vector<8x1xf32>
    %c0_i32 = arith.constant 0 : i32
    %285 = vector.broadcast %c0_i32 : i32 to vector<8x8xi32>
    %286 = arith.cmpi eq, %253, %285 : vector<8x8xi32>
    %cst_78 = arith.constant 0.000000e+00 : f32
    %287 = vector.shape_cast %284 : vector<8x1xf32> to vector<8x1xf32>
    %288 = vector.broadcast %287 : vector<8x1xf32> to vector<8x8xf32>
    %289 = vector.broadcast %cst_78 : f32 to vector<8x8xf32>
    %290 = arith.select %286, %288, %289 : vector<8x8xi1>, vector<8x8xf32>
    %291 = arith.addf %252, %290 : vector<8x8xf32>
    %292 = arith.truncf %281 : vector<8x16xf32> to vector<8x16xbf16>
    %cst_79 = arith.constant dense<0.000000e+00> : vector<8x64xf32>
    %293 = tpu.matmul %292, %247, %cst_79 {dimension_numbers = #tpu.dot_dimension_numbers<[1], [0], [0], [1], [0, 0, 1, 1], [], []>} : vector<8x16xbf16>, vector<16x64xbf16>, vector<8x64xf32> -> vector<8x64xf32>
    %294 = arith.addf %246, %293 : vector<8x64xf32>
    %295 = vector.extract_strided_slice %294 {offsets = [0, 0], sizes = [8, 16], strides = [1, 1]} : vector<8x64xf32> to vector<8x16xf32>
    %296 = arith.negf %295 : vector<8x16xf32>
    %297 = math.exp %296 : vector<8x16xf32>
    %cst_80 = arith.constant 1.000000e+00 : f32
    %298 = vector.broadcast %cst_80 : f32 to vector<8x16xf32>
    %299 = arith.addf %298, %297 : vector<8x16xf32>
    %300 = arith.divf %298, %299 : vector<8x16xf32>
    %301 = vector.extract_strided_slice %294 {offsets = [0, 16], sizes = [8, 16], strides = [1, 1]} : vector<8x64xf32> to vector<8x16xf32>
    %302 = arith.negf %301 : vector<8x16xf32>
    %303 = math.exp %302 : vector<8x16xf32>
    %cst_81 = arith.constant 1.000000e+00 : f32
    %304 = vector.broadcast %cst_81 : f32 to vector<8x16xf32>
    %305 = arith.addf %304, %303 : vector<8x16xf32>
    %306 = arith.divf %304, %305 : vector<8x16xf32>
    %307 = vector.extract_strided_slice %294 {offsets = [0, 32], sizes = [8, 16], strides = [1, 1]} : vector<8x64xf32> to vector<8x16xf32>
    %308 = math.tanh %307 : vector<8x16xf32>
    %309 = vector.extract_strided_slice %294 {offsets = [0, 48], sizes = [8, 16], strides = [1, 1]} : vector<8x64xf32> to vector<8x16xf32>
    %310 = arith.negf %309 : vector<8x16xf32>
    %311 = math.exp %310 : vector<8x16xf32>
    %cst_82 = arith.constant 1.000000e+00 : f32
    %312 = vector.broadcast %cst_82 : f32 to vector<8x16xf32>
    %313 = arith.addf %312, %311 : vector<8x16xf32>
    %314 = arith.divf %312, %313 : vector<8x16xf32>
    %315 = arith.mulf %306, %279 : vector<8x16xf32>
    %316 = arith.mulf %300, %308 : vector<8x16xf32>
    %317 = arith.addf %315, %316 : vector<8x16xf32>
    %318 = math.tanh %317 : vector<8x16xf32>
    %319 = arith.mulf %314, %318 : vector<8x16xf32>
    %320 = arith.mulf %319, %56 : vector<8x16xf32>
    %cst_83 = arith.constant dense<0.000000e+00> : vector<8xf32>
    %321 = vector.multi_reduction <add>, %320, %cst_83 [1] : vector<8x16xf32> to vector<8xf32>
    %322 = vector.shape_cast %321 : vector<8xf32> to vector<8x1xf32>
    %c1_i32 = arith.constant 1 : i32
    %323 = vector.broadcast %c1_i32 : i32 to vector<8x8xi32>
    %324 = arith.cmpi eq, %253, %323 : vector<8x8xi32>
    %cst_84 = arith.constant 0.000000e+00 : f32
    %325 = vector.shape_cast %322 : vector<8x1xf32> to vector<8x1xf32>
    %326 = vector.broadcast %325 : vector<8x1xf32> to vector<8x8xf32>
    %327 = vector.broadcast %cst_84 : f32 to vector<8x8xf32>
    %328 = arith.select %324, %326, %327 : vector<8x8xi1>, vector<8x8xf32>
    %329 = arith.addf %291, %328 : vector<8x8xf32>
    %330 = arith.truncf %319 : vector<8x16xf32> to vector<8x16xbf16>
    %cst_85 = arith.constant dense<0.000000e+00> : vector<8x64xf32>
    %331 = tpu.matmul %330, %247, %cst_85 {dimension_numbers = #tpu.dot_dimension_numbers<[1], [0], [0], [1], [0, 0, 1, 1], [], []>} : vector<8x16xbf16>, vector<16x64xbf16>, vector<8x64xf32> -> vector<8x64xf32>
    %332 = arith.addf %246, %331 : vector<8x64xf32>
    %333 = vector.extract_strided_slice %332 {offsets = [0, 0], sizes = [8, 16], strides = [1, 1]} : vector<8x64xf32> to vector<8x16xf32>
    %334 = arith.negf %333 : vector<8x16xf32>
    %335 = math.exp %334 : vector<8x16xf32>
    %cst_86 = arith.constant 1.000000e+00 : f32
    %336 = vector.broadcast %cst_86 : f32 to vector<8x16xf32>
    %337 = arith.addf %336, %335 : vector<8x16xf32>
    %338 = arith.divf %336, %337 : vector<8x16xf32>
    %339 = vector.extract_strided_slice %332 {offsets = [0, 16], sizes = [8, 16], strides = [1, 1]} : vector<8x64xf32> to vector<8x16xf32>
    %340 = arith.negf %339 : vector<8x16xf32>
    %341 = math.exp %340 : vector<8x16xf32>
    %cst_87 = arith.constant 1.000000e+00 : f32
    %342 = vector.broadcast %cst_87 : f32 to vector<8x16xf32>
    %343 = arith.addf %342, %341 : vector<8x16xf32>
    %344 = arith.divf %342, %343 : vector<8x16xf32>
    %345 = vector.extract_strided_slice %332 {offsets = [0, 32], sizes = [8, 16], strides = [1, 1]} : vector<8x64xf32> to vector<8x16xf32>
    %346 = math.tanh %345 : vector<8x16xf32>
    %347 = vector.extract_strided_slice %332 {offsets = [0, 48], sizes = [8, 16], strides = [1, 1]} : vector<8x64xf32> to vector<8x16xf32>
    %348 = arith.negf %347 : vector<8x16xf32>
    %349 = math.exp %348 : vector<8x16xf32>
    %cst_88 = arith.constant 1.000000e+00 : f32
    %350 = vector.broadcast %cst_88 : f32 to vector<8x16xf32>
    %351 = arith.addf %350, %349 : vector<8x16xf32>
    %352 = arith.divf %350, %351 : vector<8x16xf32>
    %353 = arith.mulf %344, %317 : vector<8x16xf32>
    %354 = arith.mulf %338, %346 : vector<8x16xf32>
    %355 = arith.addf %353, %354 : vector<8x16xf32>
    %356 = math.tanh %355 : vector<8x16xf32>
    %357 = arith.mulf %352, %356 : vector<8x16xf32>
    %358 = arith.mulf %357, %56 : vector<8x16xf32>
    %cst_89 = arith.constant dense<0.000000e+00> : vector<8xf32>
    %359 = vector.multi_reduction <add>, %358, %cst_89 [1] : vector<8x16xf32> to vector<8xf32>
    %360 = vector.shape_cast %359 : vector<8xf32> to vector<8x1xf32>
    %c2_i32 = arith.constant 2 : i32
    %361 = vector.broadcast %c2_i32 : i32 to vector<8x8xi32>
    %362 = arith.cmpi eq, %253, %361 : vector<8x8xi32>
    %cst_90 = arith.constant 0.000000e+00 : f32
    %363 = vector.shape_cast %360 : vector<8x1xf32> to vector<8x1xf32>
    %364 = vector.broadcast %363 : vector<8x1xf32> to vector<8x8xf32>
    %365 = vector.broadcast %cst_90 : f32 to vector<8x8xf32>
    %366 = arith.select %362, %364, %365 : vector<8x8xi1>, vector<8x8xf32>
    %367 = arith.addf %329, %366 : vector<8x8xf32>
    %368 = arith.truncf %357 : vector<8x16xf32> to vector<8x16xbf16>
    %cst_91 = arith.constant dense<0.000000e+00> : vector<8x64xf32>
    %369 = tpu.matmul %368, %247, %cst_91 {dimension_numbers = #tpu.dot_dimension_numbers<[1], [0], [0], [1], [0, 0, 1, 1], [], []>} : vector<8x16xbf16>, vector<16x64xbf16>, vector<8x64xf32> -> vector<8x64xf32>
    %370 = arith.addf %246, %369 : vector<8x64xf32>
    %371 = vector.extract_strided_slice %370 {offsets = [0, 0], sizes = [8, 16], strides = [1, 1]} : vector<8x64xf32> to vector<8x16xf32>
    %372 = arith.negf %371 : vector<8x16xf32>
    %373 = math.exp %372 : vector<8x16xf32>
    %cst_92 = arith.constant 1.000000e+00 : f32
    %374 = vector.broadcast %cst_92 : f32 to vector<8x16xf32>
    %375 = arith.addf %374, %373 : vector<8x16xf32>
    %376 = arith.divf %374, %375 : vector<8x16xf32>
    %377 = vector.extract_strided_slice %370 {offsets = [0, 16], sizes = [8, 16], strides = [1, 1]} : vector<8x64xf32> to vector<8x16xf32>
    %378 = arith.negf %377 : vector<8x16xf32>
    %379 = math.exp %378 : vector<8x16xf32>
    %cst_93 = arith.constant 1.000000e+00 : f32
    %380 = vector.broadcast %cst_93 : f32 to vector<8x16xf32>
    %381 = arith.addf %380, %379 : vector<8x16xf32>
    %382 = arith.divf %380, %381 : vector<8x16xf32>
    %383 = vector.extract_strided_slice %370 {offsets = [0, 32], sizes = [8, 16], strides = [1, 1]} : vector<8x64xf32> to vector<8x16xf32>
    %384 = math.tanh %383 : vector<8x16xf32>
    %385 = vector.extract_strided_slice %370 {offsets = [0, 48], sizes = [8, 16], strides = [1, 1]} : vector<8x64xf32> to vector<8x16xf32>
    %386 = arith.negf %385 : vector<8x16xf32>
    %387 = math.exp %386 : vector<8x16xf32>
    %cst_94 = arith.constant 1.000000e+00 : f32
    %388 = vector.broadcast %cst_94 : f32 to vector<8x16xf32>
    %389 = arith.addf %388, %387 : vector<8x16xf32>
    %390 = arith.divf %388, %389 : vector<8x16xf32>
    %391 = arith.mulf %382, %355 : vector<8x16xf32>
    %392 = arith.mulf %376, %384 : vector<8x16xf32>
    %393 = arith.addf %391, %392 : vector<8x16xf32>
    %394 = math.tanh %393 : vector<8x16xf32>
    %395 = arith.mulf %390, %394 : vector<8x16xf32>
    %396 = arith.mulf %395, %56 : vector<8x16xf32>
    %cst_95 = arith.constant dense<0.000000e+00> : vector<8xf32>
    %397 = vector.multi_reduction <add>, %396, %cst_95 [1] : vector<8x16xf32> to vector<8xf32>
    %398 = vector.shape_cast %397 : vector<8xf32> to vector<8x1xf32>
    %c3_i32 = arith.constant 3 : i32
    %399 = vector.broadcast %c3_i32 : i32 to vector<8x8xi32>
    %400 = arith.cmpi eq, %253, %399 : vector<8x8xi32>
    %cst_96 = arith.constant 0.000000e+00 : f32
    %401 = vector.shape_cast %398 : vector<8x1xf32> to vector<8x1xf32>
    %402 = vector.broadcast %401 : vector<8x1xf32> to vector<8x8xf32>
    %403 = vector.broadcast %cst_96 : f32 to vector<8x8xf32>
    %404 = arith.select %400, %402, %403 : vector<8x8xi1>, vector<8x8xf32>
    %405 = arith.addf %367, %404 : vector<8x8xf32>
    %406 = arith.truncf %395 : vector<8x16xf32> to vector<8x16xbf16>
    %cst_97 = arith.constant dense<0.000000e+00> : vector<8x64xf32>
    %407 = tpu.matmul %406, %247, %cst_97 {dimension_numbers = #tpu.dot_dimension_numbers<[1], [0], [0], [1], [0, 0, 1, 1], [], []>} : vector<8x16xbf16>, vector<16x64xbf16>, vector<8x64xf32> -> vector<8x64xf32>
    %408 = arith.addf %246, %407 : vector<8x64xf32>
    %409 = vector.extract_strided_slice %408 {offsets = [0, 0], sizes = [8, 16], strides = [1, 1]} : vector<8x64xf32> to vector<8x16xf32>
    %410 = arith.negf %409 : vector<8x16xf32>
    %411 = math.exp %410 : vector<8x16xf32>
    %cst_98 = arith.constant 1.000000e+00 : f32
    %412 = vector.broadcast %cst_98 : f32 to vector<8x16xf32>
    %413 = arith.addf %412, %411 : vector<8x16xf32>
    %414 = arith.divf %412, %413 : vector<8x16xf32>
    %415 = vector.extract_strided_slice %408 {offsets = [0, 16], sizes = [8, 16], strides = [1, 1]} : vector<8x64xf32> to vector<8x16xf32>
    %416 = arith.negf %415 : vector<8x16xf32>
    %417 = math.exp %416 : vector<8x16xf32>
    %cst_99 = arith.constant 1.000000e+00 : f32
    %418 = vector.broadcast %cst_99 : f32 to vector<8x16xf32>
    %419 = arith.addf %418, %417 : vector<8x16xf32>
    %420 = arith.divf %418, %419 : vector<8x16xf32>
    %421 = vector.extract_strided_slice %408 {offsets = [0, 32], sizes = [8, 16], strides = [1, 1]} : vector<8x64xf32> to vector<8x16xf32>
    %422 = math.tanh %421 : vector<8x16xf32>
    %423 = vector.extract_strided_slice %408 {offsets = [0, 48], sizes = [8, 16], strides = [1, 1]} : vector<8x64xf32> to vector<8x16xf32>
    %424 = arith.negf %423 : vector<8x16xf32>
    %425 = math.exp %424 : vector<8x16xf32>
    %cst_100 = arith.constant 1.000000e+00 : f32
    %426 = vector.broadcast %cst_100 : f32 to vector<8x16xf32>
    %427 = arith.addf %426, %425 : vector<8x16xf32>
    %428 = arith.divf %426, %427 : vector<8x16xf32>
    %429 = arith.mulf %420, %393 : vector<8x16xf32>
    %430 = arith.mulf %414, %422 : vector<8x16xf32>
    %431 = arith.addf %429, %430 : vector<8x16xf32>
    %432 = math.tanh %431 : vector<8x16xf32>
    %433 = arith.mulf %428, %432 : vector<8x16xf32>
    %434 = arith.mulf %433, %56 : vector<8x16xf32>
    %cst_101 = arith.constant dense<0.000000e+00> : vector<8xf32>
    %435 = vector.multi_reduction <add>, %434, %cst_101 [1] : vector<8x16xf32> to vector<8xf32>
    %436 = vector.shape_cast %435 : vector<8xf32> to vector<8x1xf32>
    %c4_i32 = arith.constant 4 : i32
    %437 = vector.broadcast %c4_i32 : i32 to vector<8x8xi32>
    %438 = arith.cmpi eq, %253, %437 : vector<8x8xi32>
    %cst_102 = arith.constant 0.000000e+00 : f32
    %439 = vector.shape_cast %436 : vector<8x1xf32> to vector<8x1xf32>
    %440 = vector.broadcast %439 : vector<8x1xf32> to vector<8x8xf32>
    %441 = vector.broadcast %cst_102 : f32 to vector<8x8xf32>
    %442 = arith.select %438, %440, %441 : vector<8x8xi1>, vector<8x8xf32>
    %443 = arith.addf %405, %442 : vector<8x8xf32>
    %444 = arith.truncf %433 : vector<8x16xf32> to vector<8x16xbf16>
    %cst_103 = arith.constant dense<0.000000e+00> : vector<8x64xf32>
    %445 = tpu.matmul %444, %247, %cst_103 {dimension_numbers = #tpu.dot_dimension_numbers<[1], [0], [0], [1], [0, 0, 1, 1], [], []>} : vector<8x16xbf16>, vector<16x64xbf16>, vector<8x64xf32> -> vector<8x64xf32>
    %446 = arith.addf %246, %445 : vector<8x64xf32>
    %447 = vector.extract_strided_slice %446 {offsets = [0, 0], sizes = [8, 16], strides = [1, 1]} : vector<8x64xf32> to vector<8x16xf32>
    %448 = arith.negf %447 : vector<8x16xf32>
    %449 = math.exp %448 : vector<8x16xf32>
    %cst_104 = arith.constant 1.000000e+00 : f32
    %450 = vector.broadcast %cst_104 : f32 to vector<8x16xf32>
    %451 = arith.addf %450, %449 : vector<8x16xf32>
    %452 = arith.divf %450, %451 : vector<8x16xf32>
    %453 = vector.extract_strided_slice %446 {offsets = [0, 16], sizes = [8, 16], strides = [1, 1]} : vector<8x64xf32> to vector<8x16xf32>
    %454 = arith.negf %453 : vector<8x16xf32>
    %455 = math.exp %454 : vector<8x16xf32>
    %cst_105 = arith.constant 1.000000e+00 : f32
    %456 = vector.broadcast %cst_105 : f32 to vector<8x16xf32>
    %457 = arith.addf %456, %455 : vector<8x16xf32>
    %458 = arith.divf %456, %457 : vector<8x16xf32>
    %459 = vector.extract_strided_slice %446 {offsets = [0, 32], sizes = [8, 16], strides = [1, 1]} : vector<8x64xf32> to vector<8x16xf32>
    %460 = math.tanh %459 : vector<8x16xf32>
    %461 = vector.extract_strided_slice %446 {offsets = [0, 48], sizes = [8, 16], strides = [1, 1]} : vector<8x64xf32> to vector<8x16xf32>
    %462 = arith.negf %461 : vector<8x16xf32>
    %463 = math.exp %462 : vector<8x16xf32>
    %cst_106 = arith.constant 1.000000e+00 : f32
    %464 = vector.broadcast %cst_106 : f32 to vector<8x16xf32>
    %465 = arith.addf %464, %463 : vector<8x16xf32>
    %466 = arith.divf %464, %465 : vector<8x16xf32>
    %467 = arith.mulf %458, %431 : vector<8x16xf32>
    %468 = arith.mulf %452, %460 : vector<8x16xf32>
    %469 = arith.addf %467, %468 : vector<8x16xf32>
    %470 = math.tanh %469 : vector<8x16xf32>
    %471 = arith.mulf %466, %470 : vector<8x16xf32>
    %472 = arith.mulf %471, %56 : vector<8x16xf32>
    %cst_107 = arith.constant dense<0.000000e+00> : vector<8xf32>
    %473 = vector.multi_reduction <add>, %472, %cst_107 [1] : vector<8x16xf32> to vector<8xf32>
    %474 = vector.shape_cast %473 : vector<8xf32> to vector<8x1xf32>
    %c5_i32 = arith.constant 5 : i32
    %475 = vector.broadcast %c5_i32 : i32 to vector<8x8xi32>
    %476 = arith.cmpi eq, %253, %475 : vector<8x8xi32>
    %cst_108 = arith.constant 0.000000e+00 : f32
    %477 = vector.shape_cast %474 : vector<8x1xf32> to vector<8x1xf32>
    %478 = vector.broadcast %477 : vector<8x1xf32> to vector<8x8xf32>
    %479 = vector.broadcast %cst_108 : f32 to vector<8x8xf32>
    %480 = arith.select %476, %478, %479 : vector<8x8xi1>, vector<8x8xf32>
    %481 = arith.addf %443, %480 : vector<8x8xf32>
    %482 = arith.truncf %471 : vector<8x16xf32> to vector<8x16xbf16>
    %cst_109 = arith.constant dense<0.000000e+00> : vector<8x64xf32>
    %483 = tpu.matmul %482, %247, %cst_109 {dimension_numbers = #tpu.dot_dimension_numbers<[1], [0], [0], [1], [0, 0, 1, 1], [], []>} : vector<8x16xbf16>, vector<16x64xbf16>, vector<8x64xf32> -> vector<8x64xf32>
    %484 = arith.addf %246, %483 : vector<8x64xf32>
    %485 = vector.extract_strided_slice %484 {offsets = [0, 0], sizes = [8, 16], strides = [1, 1]} : vector<8x64xf32> to vector<8x16xf32>
    %486 = arith.negf %485 : vector<8x16xf32>
    %487 = math.exp %486 : vector<8x16xf32>
    %cst_110 = arith.constant 1.000000e+00 : f32
    %488 = vector.broadcast %cst_110 : f32 to vector<8x16xf32>
    %489 = arith.addf %488, %487 : vector<8x16xf32>
    %490 = arith.divf %488, %489 : vector<8x16xf32>
    %491 = vector.extract_strided_slice %484 {offsets = [0, 16], sizes = [8, 16], strides = [1, 1]} : vector<8x64xf32> to vector<8x16xf32>
    %492 = arith.negf %491 : vector<8x16xf32>
    %493 = math.exp %492 : vector<8x16xf32>
    %cst_111 = arith.constant 1.000000e+00 : f32
    %494 = vector.broadcast %cst_111 : f32 to vector<8x16xf32>
    %495 = arith.addf %494, %493 : vector<8x16xf32>
    %496 = arith.divf %494, %495 : vector<8x16xf32>
    %497 = vector.extract_strided_slice %484 {offsets = [0, 32], sizes = [8, 16], strides = [1, 1]} : vector<8x64xf32> to vector<8x16xf32>
    %498 = math.tanh %497 : vector<8x16xf32>
    %499 = vector.extract_strided_slice %484 {offsets = [0, 48], sizes = [8, 16], strides = [1, 1]} : vector<8x64xf32> to vector<8x16xf32>
    %500 = arith.negf %499 : vector<8x16xf32>
    %501 = math.exp %500 : vector<8x16xf32>
    %cst_112 = arith.constant 1.000000e+00 : f32
    %502 = vector.broadcast %cst_112 : f32 to vector<8x16xf32>
    %503 = arith.addf %502, %501 : vector<8x16xf32>
    %504 = arith.divf %502, %503 : vector<8x16xf32>
    %505 = arith.mulf %496, %469 : vector<8x16xf32>
    %506 = arith.mulf %490, %498 : vector<8x16xf32>
    %507 = arith.addf %505, %506 : vector<8x16xf32>
    %508 = math.tanh %507 : vector<8x16xf32>
    %509 = arith.mulf %504, %508 : vector<8x16xf32>
    %510 = arith.mulf %509, %56 : vector<8x16xf32>
    %cst_113 = arith.constant dense<0.000000e+00> : vector<8xf32>
    %511 = vector.multi_reduction <add>, %510, %cst_113 [1] : vector<8x16xf32> to vector<8xf32>
    %512 = vector.shape_cast %511 : vector<8xf32> to vector<8x1xf32>
    %c6_i32 = arith.constant 6 : i32
    %513 = vector.broadcast %c6_i32 : i32 to vector<8x8xi32>
    %514 = arith.cmpi eq, %253, %513 : vector<8x8xi32>
    %cst_114 = arith.constant 0.000000e+00 : f32
    %515 = vector.shape_cast %512 : vector<8x1xf32> to vector<8x1xf32>
    %516 = vector.broadcast %515 : vector<8x1xf32> to vector<8x8xf32>
    %517 = vector.broadcast %cst_114 : f32 to vector<8x8xf32>
    %518 = arith.select %514, %516, %517 : vector<8x8xi1>, vector<8x8xf32>
    %519 = arith.addf %481, %518 : vector<8x8xf32>
    %520 = arith.truncf %509 : vector<8x16xf32> to vector<8x16xbf16>
    %cst_115 = arith.constant dense<0.000000e+00> : vector<8x64xf32>
    %521 = tpu.matmul %520, %247, %cst_115 {dimension_numbers = #tpu.dot_dimension_numbers<[1], [0], [0], [1], [0, 0, 1, 1], [], []>} : vector<8x16xbf16>, vector<16x64xbf16>, vector<8x64xf32> -> vector<8x64xf32>
    %522 = arith.addf %246, %521 : vector<8x64xf32>
    %523 = vector.extract_strided_slice %522 {offsets = [0, 0], sizes = [8, 16], strides = [1, 1]} : vector<8x64xf32> to vector<8x16xf32>
    %524 = arith.negf %523 : vector<8x16xf32>
    %525 = math.exp %524 : vector<8x16xf32>
    %cst_116 = arith.constant 1.000000e+00 : f32
    %526 = vector.broadcast %cst_116 : f32 to vector<8x16xf32>
    %527 = arith.addf %526, %525 : vector<8x16xf32>
    %528 = arith.divf %526, %527 : vector<8x16xf32>
    %529 = vector.extract_strided_slice %522 {offsets = [0, 16], sizes = [8, 16], strides = [1, 1]} : vector<8x64xf32> to vector<8x16xf32>
    %530 = arith.negf %529 : vector<8x16xf32>
    %531 = math.exp %530 : vector<8x16xf32>
    %cst_117 = arith.constant 1.000000e+00 : f32
    %532 = vector.broadcast %cst_117 : f32 to vector<8x16xf32>
    %533 = arith.addf %532, %531 : vector<8x16xf32>
    %534 = arith.divf %532, %533 : vector<8x16xf32>
    %535 = vector.extract_strided_slice %522 {offsets = [0, 32], sizes = [8, 16], strides = [1, 1]} : vector<8x64xf32> to vector<8x16xf32>
    %536 = math.tanh %535 : vector<8x16xf32>
    %537 = vector.extract_strided_slice %522 {offsets = [0, 48], sizes = [8, 16], strides = [1, 1]} : vector<8x64xf32> to vector<8x16xf32>
    %538 = arith.negf %537 : vector<8x16xf32>
    %539 = math.exp %538 : vector<8x16xf32>
    %cst_118 = arith.constant 1.000000e+00 : f32
    %540 = vector.broadcast %cst_118 : f32 to vector<8x16xf32>
    %541 = arith.addf %540, %539 : vector<8x16xf32>
    %542 = arith.divf %540, %541 : vector<8x16xf32>
    %543 = arith.mulf %534, %507 : vector<8x16xf32>
    %544 = arith.mulf %528, %536 : vector<8x16xf32>
    %545 = arith.addf %543, %544 : vector<8x16xf32>
    %546 = math.tanh %545 : vector<8x16xf32>
    %547 = arith.mulf %542, %546 : vector<8x16xf32>
    %548 = arith.mulf %547, %56 : vector<8x16xf32>
    %cst_119 = arith.constant dense<0.000000e+00> : vector<8xf32>
    %549 = vector.multi_reduction <add>, %548, %cst_119 [1] : vector<8x16xf32> to vector<8xf32>
    %550 = vector.shape_cast %549 : vector<8xf32> to vector<8x1xf32>
    %c7_i32 = arith.constant 7 : i32
    %551 = vector.broadcast %c7_i32 : i32 to vector<8x8xi32>
    %552 = arith.cmpi eq, %253, %551 : vector<8x8xi32>
    %cst_120 = arith.constant 0.000000e+00 : f32
    %553 = vector.shape_cast %550 : vector<8x1xf32> to vector<8x1xf32>
    %554 = vector.broadcast %553 : vector<8x1xf32> to vector<8x8xf32>
    %555 = vector.broadcast %cst_120 : f32 to vector<8x8xf32>
    %556 = arith.select %552, %554, %555 : vector<8x8xi1>, vector<8x8xf32>
    %557 = arith.addf %519, %556 : vector<8x8xf32>
    %558 = vector.broadcast %3 : vector<8x1xf32> to vector<8x8xf32>
    %559 = arith.subf %557, %558 : vector<8x8xf32>
    %560 = vector.broadcast %5 : vector<8x1xf32> to vector<8x8xf32>
    %561 = arith.mulf %559, %560 : vector<8x8xf32>
    %562 = vector.broadcast %22 : vector<8x1xf32> to vector<8x8xf32>
    %563 = arith.mulf %561, %562 : vector<8x8xf32>
    %564 = vector.broadcast %9 : vector<8x1xf32> to vector<8x8xf32>
    %565 = arith.addf %563, %564 : vector<8x8xf32>
    %c0_121 = arith.constant 0 : index
    %c0_122 = arith.constant 0 : index
    %566 = vector.load %arg3[%c0_121, %c0_122] : memref<8x8xf32, #tpu.memory_space<vmem>>, vector<8x8xf32>
    tpu.vector_store %arg3[%c0_121, %c0_122], %565 {strides = array<i32>} : memref<8x8xf32, #tpu.memory_space<vmem>>, vector<8x8xf32>,
    return
  }
}

</mosaic_0001>

<bundles_post_ra>
// kernel: xpatch_lstm_forward.1
= control target key start
LH: loop header
LB: loop body
LE: loop exit
PB: predicated region body
PF: predicated region fallthrough
CT: control target
= control target key end

     0   :  { %8 = vsyncpa [#allocation3], 0  ;;  %s2759_s0 = inlined_call_operand.hbm [shape: f32[8,16], index: 0, kind: input, shape index: {}]   ;;  %s2760_s1 = inlined_call_operand.hbm [shape: bf16[336,128], index: 1, kind: input, shape index: {}]   ;;  %s2761_s2 = inlined_call_operand.hbm [shape: f32[152,128], index: 2, kind: input, shape index: {}]   ;;  %s2762_s3 = inlined_call_operand.hbm [shape: f32[8,8], index: 3, kind: output, shape index: {}]  }
   0x1   :  { %9 = vsyncpa [#allocation6], 0 }
   0x2   :  { %10 = vsyncpa [#allocation4], 0  ;;  %s2372_s12 = smov [#allocation5]  }
   0x3   :  { %s26_s13 = sshll.u32 %s2372_s12, 4  ;;  %s27_s13 = int_to_ptr.vmem [resolvable:$true] %s26_s13 }
   0x4   :  { %s2294_s14 = scalar_lea.vmem %s27_s13, 2688  ;;  %p2299_p1 = scmp.lt.s32.totalorder %s27_s13, %s27_s13 }
   0x5   :  { %p2295_p0 = scmp.ne.s32.totalorder %s27_s13, %s2294_s14  ;;  %p2300_p2 = scmp.lt.s32.totalorder %s2294_s14, %s2294_s14 }
   0x7   :  { %p2301_p3 = por %p2300_p2, %p2299_p1 }
   0x9   :  { %p2302_p4 = pnand %p2301_p3, %p2295_p0 }
   0xb   :  { %2305 = shalt.err (!%p2302_p4)
}
   0xc   :  { %s2373_s15 = smov 64   ;;  %s2374_s16 = smov 4  }
   0xd   :  { %32 = dma.hbm_to_vmem [thread:$0]  %s2760_s1, 2688, %s27_s13, [#allocation6], %s2373_s15, %s2373_s15, %s2374_s16  }
   0xe   :  { %s2375_s19 = smov [#allocation2]   ;;  %s2376_s21 = smov [#allocation7]  }
   0xf   :  { %s17_s20 = sshll.u32 %s2375_s19, 4  ;;  %s38_s22 = sshll.u32 %s2376_s21, 4  ;;  %s18_s20 = int_to_ptr.vmem [resolvable:$true] %s17_s20  ;;  %s39_s22 = int_to_ptr.vmem [resolvable:$true] %s38_s22 }
  0x10   :  { %s2314_s23 = scalar_lea.vmem %s18_s20, 128  ;;  %p2319_p6 = scmp.lt.s32.totalorder %s18_s20, %s18_s20 }
  0x11   :  { %p2315_p5 = scmp.ne.s32.totalorder %s18_s20, %s2314_s23  ;;  %p2320_p7 = scmp.lt.s32.totalorder %s2314_s23, %s2314_s23 }
  0x13   :  { %p2321_p8 = por %p2320_p7, %p2319_p6 }
  0x15   :  { %p2322_p9 = pnand %p2321_p8, %p2315_p5 }
  0x17   :  { %2325 = shalt.err (!%p2322_p9)
}
  0x18   :  { %20 = dma.hbm_to_vmem [thread:$0]  %s2759_s0, 128, %s18_s20, [#allocation3]  }
  0x19   :  { %s2334_s26 = scalar_lea.vmem %s39_s22, 2432  ;;  %p2339_p11 = scmp.lt.s32.totalorder %s39_s22, %s39_s22 }
  0x1a   :  { %p2335_p10 = scmp.ne.s32.totalorder %s39_s22, %s2334_s26  ;;  %p2340_p12 = scmp.lt.s32.totalorder %s2334_s26, %s2334_s26 }
  0x1c   :  { %p2341_p13 = por %p2340_p12, %p2339_p11 }
  0x1e   :  { %p2342_p0 = pnand %p2341_p13, %p2335_p10 }
  0x20   :  { %2345 = shalt.err (!%p2342_p0)
}
  0x21   :  { %s2377_s1 = smov 128   ;;  %s2378_s27 = smov 8  }
  0x22   :  { %44 = dma.hbm_to_vmem [thread:$0]  %s2761_s2, 2432, %s39_s22, [#allocation6], %s2377_s1, %s2377_s1, %s2378_s27  }
  0x23   :  { %2366 = dma.done.wait [#allocation3], 128  }
  0x24   :  { %2367 = vsyncadd [#allocation3], 4294967168 }
  0x25   :  { %2368 = dma.done.wait [#allocation6], 5120  }
  0x26   :  { %2369 = vsyncadd [#allocation6], 4294962176  ;;  %vm57_vm0 = vcmask 130048   ;;  %v55_v0 = vld [vmem:[#allocation2] sm:$0xff]  ;;  %v56_v2 = vld [vmem:[#allocation7 + $0x88] sm:$0xff]  ;;  %v2379_v3 = vmov 0   ;;  %v105_v33 = vlaneseq }
  0x27   :  { %v58_v1 = vsel %vm57_vm0, %v55_v0, 0.0  ;;  %2177 = vset.pattern.permute.xlu1 %v2379_v3  ;;  %v2380_v4 = vmov 1   ;;  %v2181_v10 = vld [vmem:[#allocation5] sm:$0xff]   ;;  %v2381_v11 = vmov 0.0   ;;  %vm2382_vm1 = vmmov 0   ;;  %v98_v23 = vld [vmem:[#allocation7 + $0x48] sm:$0xff] }
  0x28   :  { %59 = vadd.xlane.f32.xlu0 %v58_v1  ;;  %75 = vperm.xlu1 %2177, %v56_v2   ;;  %v97_v24 = vld [vmem:[#allocation7 + $0x40] sm:$0xff]  ;;  %v96_v25 = vld [vmem:[#allocation7 + $0x38] sm:$0xff]  ;;  %v95_v26 = vld [vmem:[#allocation7 + $0x30] sm:$0xff]  ;;  %v2456_v34 = vshrl.u32 %v105_v33, 7  ;;  %vm163_vm2 = vcmask 654336   ;;  %vm179_vm3 = vcmask 1040384  }
  0x29   :  { %1989 = vmatprep.subr.bf16.mxu0 %v2381_v11  ;;  %1995 = vmatprep.subr.mxu1 %v2381_v11  ;;  %v94_v27 = vld [vmem:[#allocation7 + $0x28] sm:$0xff]  ;;  %v93_v28 = vld [vmem:[#allocation7 + $0x20] sm:$0xff]  ;;  %v92_v29 = vld [vmem:[#allocation7 + $0x18] sm:$0xff]  ;;  %vm399_vm4 = vcmask 1043456   ;;  %vm379_vm5 = vcmask 162816   ;;  %vm610_vm6 = vcmask 1041408  }
  0x2a   :  { %1990 = vmatpush3.bf16.msra.mxu0 %v2181_v10  ;;  %1991 = vmatprep.mubr.msk.bf16.mxu0 %vm2382_vm1, %v2381_v11  ;;  %v91_v30 = vld [vmem:[#allocation7 + $0x10] sm:$0xff]  ;;  %v90_v31 = vld [vmem:[#allocation7 + $0x8] sm:$0xff]  ;;  %v89_v32 = vld [vmem:[#allocation7] sm:$0xff]  ;;  %v2459_v35 = vsub.s32 0, %v2456_v34  ;;  %vm1030_vm7 = vcmask 31744   ;;  %vm1111_vm8 = vcmask 64512  }
  0x2b   :  { %2018 = vmatprep.subr.bf16.mxu0 %v2381_v11  ;;  %2015 = vmatprep.mubr.msk.f32.mxu1 %vm2382_vm1, %v2381_v11  ;;  %v2461_v36 = vld [vmem:[#allocation7 + $0x68] sm:$0x1f]  ;;  %v2183_v1 = vld [vmem:[#allocation5 + $0x20] sm:$0xff]   ;;  %s2383_s0 = smov 96   ;;  %s2384_s2 = smov 16  }
  0x2c   :  { %2178 = vset.pattern.permute.xlu1 %v2380_v4  ;;  %1996 = vmatpush3.msra.mxu1 %v98_v23  ;;  %v108_v37 = vrot.slane %v2461_v36, %v2459_v35  ;;  %v2185_v4 = vld [vmem:[#allocation5 + $0x10] sm:$0xff]   ;;  %s2385_s30 = smov 32   ;;  %s2386_s4 = smov 80  }
  0x2d   :  { %80 = vperm.xlu1 %2178, %v56_v2   ;;  %1997 = vmatprep.subr.mxu1 %v2381_v11  ;;  %v2184_v2 = vld [vmem:[#allocation5 + $0x18] sm:$0xff]   ;;  %s2388_s5 = smov 48   ;;  %s2390_s6 = smov [#allocation8]  }
  0x2e   :  { %1998 = vmatpush3.msra.mxu1 %v97_v24  ;;  %s1863_s7 = sshll.u32 %s2390_s6, 4  ;;  %s1864_s7 = int_to_ptr.vmem [resolvable:$true] %s1863_s7 }
  0x2f   :  { %1999 = vmatprep.subr.mxu1 %v2381_v11  ;;  %s2346_s8 = scalar_lea.vmem %s1864_s7, 128  ;;  %p2351_p2 = scmp.lt.s32.totalorder %s1864_s7, %s1864_s7 }
  0x30   :  { %2000 = vmatpush3.msra.mxu1 %v96_v25  ;;  %p2347_p1 = scmp.ne.s32.totalorder %s1864_s7, %s2346_s8  ;;  %p2352_p3 = scmp.lt.s32.totalorder %s2346_s8, %s2346_s8 }
  0x31   :  { %2001 = vmatprep.subr.mxu1 %v2381_v11 }
  0x32   :  { %2002 = vmatpush3.msra.mxu1 %v95_v26  ;;  %p2353_p4 = por %p2352_p3, %p2351_p2 }
  0x33   :  { %2003 = vmatprep.subr.mxu1 %v2381_v11 }
  0x34   :  { %2004 = vmatpush3.msra.mxu1 %v94_v27  ;;  %p2354_p5 = pnand %p2353_p4, %p2347_p1 }
  0x35   :  { %2005 = vmatprep.subr.mxu1 %v2381_v11 }
  0x36   :  { %2006 = vmatpush3.msra.mxu1 %v93_v28 }
  0x37   :  { %2007 = vmatprep.subr.mxu1 %v2381_v11 }
  0x38   :  { %2008 = vmatpush3.msra.mxu1 %v92_v29 }
  0x39   :  { %2009 = vmatprep.subr.mxu1 %v2381_v11 }
  0x3a   :  { %2010 = vmatpush3.msra.mxu1 %v91_v30 }
  0x3b   :  { %2011 = vmatprep.subr.mxu1 %v2381_v11 }
  0x3c   :  { %2012 = vmatpush3.msra.mxu1 %v90_v31  ;;  %v2187_v31 = vld [vmem:[#allocation5 + $0x50] sm:$0xff]  }
  0x3d   :  { %2013 = vmatprep.subr.mxu1 %v2381_v11 }
  0x3e   :  { %2014 = vmatpush3.msra.mxu1 %v89_v32 }
  0x3f   :  { %2032 = vmatprep.subr.mxu1 %v2381_v11 }
  0xa3   :  { %v76_v15 = vpop.permute.xlu1 %75 }
  0xa8   :  { %v2436_v19 = vpop.permute.xlu1 %80 }
  0xb1   :  { %v60_v5 = vpop.xlane.xlu0 %59 }
  0xb2   :  { %v2423_v6 = vmul.f32 0.0625, %v60_v5  ;;  %v2186_v5 = vld [vmem:[#allocation5 + $0x8] sm:$0xff]  }
  0xb4   :  { %v63_v7 = vsub.f32 %v55_v0, %v2423_v6  ;;  %v2182_v0 = vld [vmem:[#allocation5 + $0x28] sm:$0xff]  }
  0xb6   :  { %v64_v8 = vmul.f32 %v63_v7, %v63_v7 }
  0xb8   :  { %v65_v9 = vsel %vm57_vm0, %v64_v8, 0.0 }
  0xb9   :  { %66 = vadd.xlane.f32.xlu0 %v65_v9 }
 0x142   :  { %v67_v12 = vpop.xlane.xlu0 %66 }
 0x143   :  { %v68_v13 = vmul.f32 0.0625, %v67_v12 }
 0x145   :  { %v69_v14 = vadd.f32 1e-05, %v68_v13 }
 0x147   :  { %2201 = vrsqrt.f32 %v69_v14 }
 0x154   :  { %v2202_v16 = vpop.eup %2201 }
 0x155   :  { %v2434_v17 = vmul.f32 %v2202_v16, %v69_v14  ;;  %v72_v18 = vmul.f32 %v2202_v16, %v63_v7  ;;  %v2481_v16 = vsub.s32 2, %v2456_v34 }
 0x157   :  { %v78_v20 = vmul.f32 %v76_v15, %v72_v18  ;;  %v2478_v15 = vsub.s32 1, %v2456_v34  ;;  %v2484_v18 = vsub.s32 3, %v2456_v34  ;;  %v274_v24 = vrot.slane %v2461_v36, %v2481_v16 }
 0x159   :  { %v83_v21 = vadd.f32 %v2436_v19, %v78_v20  ;;  %v279_v26 = vrot.slane %v2461_v36, %v2484_v18  ;;  %v284_v28 = vrot.slane %v2461_v36, %v2478_v15 }
 0x15b   :  { %v2439_v22 = vpack.c.bf16 %v83_v21, %v83_v21 }
 0x15d   :  { %1992 = vmatmul.mubr.msk.bf16.vlgmr.msra.gmra.mxu0 %vm57_vm0, %v2439_v22 }
 0x15e   :  { %2028 = vmatprep.mubr.msk.bf16.mxu0 %vm2382_vm1, %v2381_v11  ;;  %2019 = vmatpush3.bf16.msra.mxu0 %v2182_v0 }
 0x15f   :  { %2020 = vmatprep.subr.bf16.mxu0 %v2381_v11 }
 0x162   :  { %2021 = vmatpush3.bf16.msra.mxu0 %v2183_v1 }
 0x163   :  { %2022 = vmatprep.subr.bf16.mxu0 %v2381_v11 }
 0x166   :  { %2023 = vmatpush3.bf16.msra.mxu0 %v2184_v2 }
 0x167   :  { %2024 = vmatprep.subr.bf16.mxu0 %v2381_v11 }
 0x16a   :  { %2025 = vmatpush3.bf16.msra.mxu0 %v2185_v4 }
 0x16b   :  { %2026 = vmatprep.subr.bf16.mxu0 %v2381_v11 }
 0x16e   :  { %2027 = vmatpush3.bf16.msra.mxu0 %v2186_v5 }
 0x16f   :  { %2041 = vmatprep.subr.bf16.mxu0 %v2381_v11 }
 0x21d   :  { %v152_v38 = vpop.f32.mrf.mxu0 }
 0x21e   :  { %v153_v39 = vadd.f32 %v152_v38, %v108_v37  ;;  %v2188_v37 = vld [vmem:[#allocation5 + $0x48] sm:$0xff]   ;;  %v2189_v38 = vld [vmem:[#allocation5 + $0x40] sm:$0xff]  }
 0x21f   :  { %v1993_v40 = vpop.f32.mrf.mxu0 }
 0x220   :  { %v159_v41 = vmul.f32 0.70710677, %v153_v39  ;;  %v158_v45 = vmul.f32 0.5, %v153_v39  ;;  %v2190_v39 = vld [vmem:[#allocation5 + $0x38] sm:$0xff]   ;;  %v2191_v40 = vld [vmem:[#allocation5 + $0x30] sm:$0xff]  }
 0x221   :  { %v155_v42 = vpop.f32.mrf.mxu0 }
 0x222   :  { %2203 = verf.f32 %v159_v41  ;;  %v2504_v42 = vld [vmem:[#allocation7 + $0x60] sm:$0xf] }
 0x223   :  { %v1994_v43 = vpop.f32.mrf.mxu0 }
 0x224   :  { %v2506_v43 = vld [vmem:[#allocation7 + $0x58] sm:$0xff] }
 0x22f   :  { %v2204_v44 = vpop.eup %2203 }
 0x230   :  { %v161_v46 = vadd.f32 1.0, %v2204_v44  ;;  %v2511_v44 = vld [vmem:[#allocation7 + $0x50] sm:$0xff] }
 0x232   :  { %v162_v47 = vmul.f32 %v161_v46, %v158_v45  ;;  %v2517_v45 = vld [vmem:[#allocation7 + $0x70] sm:$0x7f] }
 0x233   :  { %v300_v46 = vrot.slane %v2517_v45, %v2459_v35 }
 0x234   :  { %v171_v48 = vmul.f32 %v162_v47, %v162_v47  ;;  %v164_v49 = vsel %vm163_vm2, %v162_v47, 0.0 }
 0x235   :  { %v165_v50 = vrot.slane %v164_v49, 4 }
 0x236   :  { %v172_v51 = vsel %vm163_vm2, %v171_v48, 0.0 }
 0x237   :  { %v166_v52 = vadd.f32 %v165_v50, %v164_v49  ;;  %v173_v53 = vrot.slane %v172_v51, 4 }
 0x239   :  { %v167_v54 = vrot.slane %v166_v52, 2  ;;  %v174_v55 = vadd.f32 %v173_v53, %v172_v51 }
 0x23b   :  { %v168_v56 = vadd.f32 %v167_v54, %v166_v52  ;;  %v175_v57 = vrot.slane %v174_v55, 2 }
 0x23d   :  { %v169_v58 = vrot.slane %v168_v56, 1  ;;  %v176_v59 = vadd.f32 %v175_v57, %v174_v55 }
 0x23f   :  { %v177_v60 = vrot.slane %v176_v59, 1  ;;  %v170_v61 = vadd.f32 %v169_v58, %v168_v56 }
 0x241   :  { %v178_v62 = vadd.f32 %v177_v60, %v176_v59 }
 0x243   :  { %v180_v63 = vsel %vm179_vm3, %v170_v61, %v178_v62 }
 0x244   :  { %2016 = vmatmul.mubr.msk.f32.vlgmr.msra.gmra.mxu1 %vm163_vm2, %v180_v63 }
 0x245   :  { %2038 = vmatprep.mubr.msk.f32.mxu1 %vm2382_vm1, %v2381_v11  ;;  %2033 = vmatpush3.msk.msra.mxu1 %vm399_vm4, %v2504_v42 }
 0x246   :  { %2034 = vmatprep.subr.mxu1 %v2381_v11 }
 0x247   :  { %2035 = vmatpush3.msra.mxu1 %v2506_v43 }
 0x248   :  { %2036 = vmatprep.subr.mxu1 %v2381_v11 }
 0x249   :  { %2037 = vmatpush3.msra.mxu1 %v2511_v44 }
 0x24a   :  { %2055 = vmatprep.subr.bf16.mxu1 %v2381_v11 }
 0x304   :  { %v250_v7 = vpop.f32.mrf.mxu1 }
 0x305   :  { %v254_v8 = vmul.f32 %v250_v7, %v250_v7  ;;  %v262_v14 = vrot.slane %v250_v7, %v2459_v35 }
 0x306   :  { %v2017_v9 = vpop.f32.mrf.mxu1 }
 0x307   :  { %v256_v10 = vrot.slane %v254_v8, 7  ;;  %v263_v21 = vsub.f32 %v162_v47, %v262_v14 }
 0x309   :  { %v258_v12 = vsub.f32 %v250_v7, %v256_v10 }
 0x30b   :  { %v264_v13 = vadd.f32 1e-05, %v258_v12 }
 0x30d   :  { %2205 = vrsqrt.f32 %v264_v13 }
 0x31a   :  { %v2206_v20 = vpop.eup %2205 }
 0x31b   :  { %v269_v23 = vrot.slane %v2206_v20, %v2478_v15 }
 0x31d   :  { %v270_v25 = vmul.f32 %v269_v23, %v263_v21  ;;  %v2192_v21 = vld [vmem:[#allocation5 + $0x60] ss:$0 sps:$4 sm:$0x33]  }
 0x31e   :  { %v612_v23 = vsel %vm610_vm6, %v2192_v21, 0  ;;  %v2194_v21 = vld [vmem:[#allocation5 + $0x70] ss:$0 sps:$4 sm:$0x33]  }
 0x31f   :  { %v275_v27 = vmul.f32 %v274_v24, %v270_v25  ;;  %v2193_v24 = vld [vmem:[#allocation5 + $0x58] sm:$0xff]  }
 0x321   :  { %v280_v29 = vadd.f32 %v279_v26, %v275_v27 }
 0x323   :  { %v285_v30 = vmul.f32 %v284_v28, %v280_v29  ;;  %v510_v41 = vpack.c.bf16 %v280_v29, %v280_v29 }
 0x325   :  { %v296_v32 = vpack.c.bf16 %v285_v30, %v285_v30 }
 0x327   :  { %2029 = vmatmul.mubr.msk.bf16.vlgmr.msra.gmra.mxu0 %vm163_vm2, %v296_v32  ;;  %v2532_v32 = vsub.s32 4, %v2456_v34 }
 0x328   :  { %2042 = vmatpush3.bf16.msra.mxu0 %v2187_v31  ;;  %2051 = vmatprep.mubr.msk.bf16.mxu0 %vm2382_vm1, %v2381_v11 }
 0x329   :  { %2043 = vmatprep.subr.bf16.mxu0 %v2381_v11 }
 0x32c   :  { %2044 = vmatpush3.bf16.msra.mxu0 %v2188_v37 }
 0x32d   :  { %2045 = vmatprep.subr.bf16.mxu0 %v2381_v11 }
 0x330   :  { %2046 = vmatpush3.bf16.msra.mxu0 %v2189_v38 }
 0x331   :  { %2047 = vmatprep.subr.bf16.mxu0 %v2381_v11 }
 0x334   :  { %2048 = vmatpush3.bf16.msra.mxu0 %v2190_v39 }
 0x335   :  { %2049 = vmatprep.subr.bf16.mxu0 %v2381_v11 }
 0x338   :  { %2050 = vmatpush3.bf16.msra.mxu0 %v2191_v40  ;;  %v493_v40 = vrot.slane %v2517_v45, %v2484_v18 }
 0x339   :  { %2080 = vmatprep.subr.bf16.mxu0 %v2381_v11 }
 0x33b   :  { %2052 = vmatmul.mubr.msk.bf16.vlgmr.msra.gmra.mxu0 %vm163_vm2, %v510_v41 }
 0x33c   :  { %2082 = vmatprep.mubr.msk.bf16.mxu0 %vm2382_vm1, %v2381_v11 }
 0x3e7   :  { %v368_v47 = vpop.f32.mrf.mxu0 }
 0x3e8   :  { %v369_v48 = vadd.f32 %v368_v47, %v300_v46  ;;  %v498_v46 = vrot.slane %v2517_v45, %v2532_v32 }
 0x3e9   :  { %v2030_v49 = vpop.f32.mrf.mxu0 }
 0x3ea   :  { %v375_v50 = vmul.f32 0.70710677, %v369_v48  ;;  %v374_v54 = vmul.f32 0.5, %v369_v48  ;;  %v588_v49 = vrot.slane %v2517_v45, %v2478_v15 }
 0x3eb   :  { %v371_v51 = vpop.f32.mrf.mxu0 }
 0x3ec   :  { %2207 = verf.f32 %v375_v50 }
 0x3ed   :  { %v2031_v52 = vpop.f32.mrf.mxu0 }
 0x3f9   :  { %v2208_v53 = vpop.eup %2207 }
 0x3fa   :  { %v377_v55 = vadd.f32 1.0, %v2208_v53  ;;  %v597_v53 = vrot.slane %v2517_v45, %v2481_v16 }
 0x3fb   :  { %v578_v56 = vpop.f32.mrf.mxu0 }
 0x3fc   :  { %v378_v57 = vmul.f32 %v377_v55, %v374_v54 }
 0x3fd   :  { %v2053_v58 = vpop.f32.mrf.mxu0 }
 0x3fe   :  { %v380_v59 = vsel %vm379_vm5, %v378_v57, 0.0  ;;  %v387_v60 = vmul.f32 %v378_v57, %v378_v57 }
 0x3ff   :  { %v381_v61 = vrot.slane %v380_v59, 4  ;;  %v581_v62 = vpop.f32.mrf.mxu0 }
 0x400   :  { %v388_v63 = vsel %vm379_vm5, %v387_v60, 0.0 }
 0x401   :  { %v382_v0 = vadd.f32 %v381_v61, %v380_v59  ;;  %v389_v1 = vrot.slane %v388_v63, 4  ;;  %v2054_v2 = vpop.f32.mrf.mxu0 }
 0x403   :  { %v383_v4 = vrot.slane %v382_v0, 2  ;;  %v390_v5 = vadd.f32 %v389_v1, %v388_v63 }
 0x405   :  { %v384_v7 = vadd.f32 %v383_v4, %v382_v0  ;;  %v391_v8 = vrot.slane %v390_v5, 2 }
 0x407   :  { %v385_v9 = vrot.slane %v384_v7, 1  ;;  %v392_v10 = vadd.f32 %v391_v8, %v390_v5 }
 0x409   :  { %v393_v12 = vrot.slane %v392_v10, 1  ;;  %v386_v13 = vadd.f32 %v385_v9, %v384_v7 }
 0x40b   :  { %v394_v14 = vadd.f32 %v393_v12, %v392_v10 }
 0x40d   :  { %v395_v20 = vsel %vm179_vm3, %v386_v13, %v394_v14 }
 0x40e   :  { %2039 = vmatmul.mubr.msk.f32.vlgmr.msra.gmra.mxu1 %vm379_vm5, %v395_v20 }
 0x40f   :  { %2059 = vmatprep.mubr.msk.bf16.mxu1 %vm2382_vm1, %v2381_v11  ;;  %2056 = vmatpush3.bf16.msra.mxu1 %v612_v23  ;;  %v796_v23 = vsel %vm610_vm6, %v2194_v21, 0 }
 0x410   :  { %2057 = vmatprep.subr.bf16.mxu1 %v2381_v11 }
 0x413   :  { %2058 = vmatpush3.bf16.msra.mxu1 %v2193_v24  ;;  %v2195_v24 = vld [vmem:[#allocation5 + $0x68] sm:$0xff]  }
 0x414   :  { %2063 = vmatprep.subr.mxu1 %v2381_v11 }
 0x4ce   :  { %v469_v25 = vpop.f32.mrf.mxu1 }
 0x4cf   :  { %v473_v26 = vmul.f32 %v469_v25, %v469_v25  ;;  %v481_v31 = vrot.slane %v469_v25, %v2459_v35 }
 0x4d0   :  { %v2040_v27 = vpop.f32.mrf.mxu1 }
 0x4d1   :  { %v475_v28 = vrot.slane %v473_v26, 7  ;;  %v482_v38 = vsub.f32 %v378_v57, %v481_v31 }
 0x4d3   :  { %v477_v29 = vsub.f32 %v469_v25, %v475_v28 }
 0x4d5   :  { %v483_v30 = vadd.f32 1e-05, %v477_v29 }
 0x4d7   :  { %2209 = vrsqrt.f32 %v483_v30 }
 0x4e4   :  { %v2210_v37 = vpop.eup %2209 }
 0x4e5   :  { %v488_v39 = vrot.slane %v2210_v37, %v2478_v15  ;;  %v767_v37 = vsub.s32 5, %v2456_v34 }
 0x4e7   :  { %v489_v41 = vmul.f32 %v488_v39, %v482_v38  ;;  %v772_v38 = vsub.s32 6, %v2456_v34 }
 0x4e9   :  { %v494_v47 = vmul.f32 %v493_v40, %v489_v41 }
 0x4eb   :  { %v499_v48 = vadd.f32 %v498_v46, %v494_v47  ;;  %v768_v46 = vrot.slane %v2517_v45, %v767_v37 }
 0x4ed   :  { %v584_v50 = vadd.f32 %v578_v56, %v499_v48  ;;  %v773_v48 = vrot.slane %v2517_v45, %v772_v38  ;;  %v2581_v45 = vld [vmem:[#allocation7 + $0x78] sm:$0xff] }
 0x4ef   :  { %v589_v51 = vadd.f32 %v588_v49, %v584_v50 }
 0x4f1   :  { %v593_v52 = vpack.c.bf16 %v589_v51, %v589_v51  ;;  %v2196_v51 = vld [vmem:[#allocation5 + $0x80] sm:$0xff]  }
 0x4f3   :  { %2060 = vmatmul.mubr.msk.bf16.vlgmr.msra.gmra.mxu1 %vm379_vm5, %v593_v52 }
 0x4f4   :  { %2064 = vmatpush3.msk.msra.mxu1 %vm399_vm4, %v2504_v42  ;;  %2069 = vmatprep.mubr.msk.f32.mxu1 %vm2382_vm1, %v2381_v11 }
 0x4f5   :  { %2065 = vmatprep.subr.mxu1 %v2381_v11 }
 0x4f6   :  { %2066 = vmatpush3.msra.mxu1 %v2506_v43 }
 0x4f7   :  { %2067 = vmatprep.subr.mxu1 %v2381_v11 }
 0x4f8   :  { %2068 = vmatpush3.msra.mxu1 %v2511_v44 }
 0x4f9   :  { %2072 = vmatprep.subr.bf16.mxu1 %v2381_v11 }
 0x5b3   :  { %v648_v54 = vpop.f32.mrf.mxu1 }
 0x5b4   :  { %v649_v55 = vadd.f32 %v648_v54, %v597_v53  ;;  %v2197_v53 = vld [vmem:[#allocation5 + $0x78] sm:$0xff]   ;;  %v782_v54 = vrot.slane %v2581_v45, %v2459_v35 }
 0x5b5   :  { %v2061_v56 = vpop.f32.mrf.mxu1  ;;  %2081 = vmatpush3.bf16.msra.mxu0 %v2197_v53  ;;  %v1055_v53 = vld [vmem:[#allocation5 + $0x90] sm:$0x3] }
 0x5b6   :  { %v655_v42 = vmul.f32 0.70710677, %v649_v55  ;;  %v654_v60 = vmul.f32 0.5, %v649_v55  ;;  %2092 = vmatprep.subr.bf16.mxu0 %v2381_v11 }
 0x5b7   :  { %v651_v57 = vpop.f32.mrf.mxu1 }
 0x5b8   :  { %2211 = verf.f32 %v655_v42 }
 0x5b9   :  { %v2062_v58 = vpop.f32.mrf.mxu1 }
 0x5c5   :  { %v2212_v59 = vpop.eup %2211 }
 0x5c6   :  { %v657_v61 = vadd.f32 1.0, %v2212_v59 }
 0x5c8   :  { %v658_v43 = vmul.f32 %v657_v61, %v654_v60 }
 0x5ca   :  { %v659_v62 = vsel %vm379_vm5, %v658_v43, 0.0  ;;  %v666_v63 = vmul.f32 %v658_v43, %v658_v43 }
 0x5cb   :  { %v660_v44 = vrot.slane %v659_v62, 4 }
 0x5cc   :  { %v667_v0 = vsel %vm379_vm5, %v666_v63, 0.0 }
 0x5cd   :  { %v661_v1 = vadd.f32 %v660_v44, %v659_v62  ;;  %v668_v2 = vrot.slane %v667_v0, 4 }
 0x5cf   :  { %v662_v4 = vrot.slane %v661_v1, 2  ;;  %v669_v5 = vadd.f32 %v668_v2, %v667_v0 }
 0x5d1   :  { %v663_v7 = vadd.f32 %v662_v4, %v661_v1  ;;  %v670_v8 = vrot.slane %v669_v5, 2 }
 0x5d3   :  { %v664_v9 = vrot.slane %v663_v7, 1  ;;  %v671_v10 = vadd.f32 %v670_v8, %v669_v5 }
 0x5d5   :  { %v672_v12 = vrot.slane %v671_v10, 1  ;;  %v665_v13 = vadd.f32 %v664_v9, %v663_v7 }
 0x5d7   :  { %v673_v14 = vadd.f32 %v672_v12, %v671_v10  ;;  %v2198_v10 = vld [vmem:[#allocation5 + $0x88] sm:$0xff]  }
 0x5d9   :  { %v674_v20 = vsel %vm179_vm3, %v665_v13, %v673_v14 }
 0x5da   :  { %2070 = vmatmul.mubr.msk.f32.vlgmr.msra.gmra.mxu1 %vm379_vm5, %v674_v20 }
 0x5db   :  { %2076 = vmatprep.mubr.msk.bf16.mxu1 %vm2382_vm1, %v2381_v11  ;;  %2073 = vmatpush3.bf16.msra.mxu1 %v796_v23 }
 0x5dc   :  { %2074 = vmatprep.subr.bf16.mxu1 %v2381_v11 }
 0x5df   :  { %2075 = vmatpush3.bf16.msra.mxu1 %v2195_v24 }
 0x5e0   :  { %2086 = vmatprep.subr.bf16.mxu1 %v2381_v11 }
 0x69a   :  { %v744_v25 = vpop.f32.mrf.mxu1 }
 0x69b   :  { %v748_v26 = vmul.f32 %v744_v25, %v744_v25  ;;  %v756_v31 = vrot.slane %v744_v25, %v2459_v35 }
 0x69c   :  { %v2071_v27 = vpop.f32.mrf.mxu1 }
 0x69d   :  { %v750_v28 = vrot.slane %v748_v26, 7  ;;  %v757_v40 = vsub.f32 %v658_v43, %v756_v31 }
 0x69f   :  { %v752_v29 = vsub.f32 %v744_v25, %v750_v28  ;;  %v967_v25 = vrot.slane %v2581_v45, %v2481_v16  ;;  %v972_v28 = vrot.slane %v2581_v45, %v2484_v18 }
 0x6a1   :  { %v758_v30 = vadd.f32 1e-05, %v752_v29 }
 0x6a3   :  { %2213 = vrsqrt.f32 %v758_v30 }
 0x6b0   :  { %v2214_v39 = vpop.eup %2213 }
 0x6b1   :  { %v763_v41 = vrot.slane %v2214_v39, %v2478_v15  ;;  %v980_v39 = vrot.slane %v2581_v45, %v772_v38 }
 0x6b3   :  { %v764_v47 = vmul.f32 %v763_v41, %v757_v40 }
 0x6b5   :  { %v769_v49 = vmul.f32 %v768_v46, %v764_v47 }
 0x6b7   :  { %v774_v50 = vadd.f32 %v773_v48, %v769_v49 }
 0x6b9   :  { %v778_v52 = vpack.c.bf16 %v774_v50, %v774_v50 }
 0x6bb   :  { %2077 = vmatmul.mubr.msk.bf16.vlgmr.msra.gmra.mxu1 %vm379_vm5, %v778_v52 }
 0x6bc   :  { %2087 = vmatpush3.bf16.msra.mxu1 %v2196_v51  ;;  %2088 = vmatprep.mubr.msk.bf16.mxu1 %vm2382_vm1, %v2381_v11 }
 0x6bd   :  { %2098 = vmatprep.subr.bf16.mxu1 %v2381_v11 }
 0x6c3   :  { %2089 = vmatmul.mubr.msk.bf16.vlgmr.msra.gmra.mxu1 %vm57_vm0, %v2439_v22  ;;  %v904_v22 = vrot.slane %v2581_v45, %v2478_v15 }
 0x6c4   :  { %2100 = vmatprep.mubr.msk.bf16.mxu1 %vm2382_vm1, %v2381_v11 }
 0x77b   :  { %v832_v55 = vpop.f32.mrf.mxu1 }
 0x77c   :  { %v833_v56 = vadd.f32 %v832_v55, %v782_v54  ;;  %v1065_v54 = vsel %vm610_vm6, %v1055_v53, 0 }
 0x77d   :  { %v2078_v42 = vpop.f32.mrf.mxu1  ;;  %2099 = vmatpush3.bf16.msra.mxu1 %v1065_v54 }
 0x77e   :  { %v839_v57 = vmul.f32 0.70710677, %v833_v56  ;;  %v838_v35 = vmul.f32 0.5, %v833_v56  ;;  %2110 = vmatprep.subr.bf16.mxu1 %v2381_v11  ;;  %v1047_v42 = vsub.s32 7, %v2456_v34 }
 0x77f   :  { %v835_v58 = vpop.f32.mrf.mxu1 }
 0x780   :  { %2215 = verf.f32 %v839_v57  ;;  %v1048_v57 = vrot.slane %v2581_v45, %v1047_v42 }
 0x781   :  { %v2079_v59 = vpop.f32.mrf.mxu1 }
 0x782   :  { %v1904_v59 = vld [vmem:[#allocation7 + $0x80] ss:$0 sm:$0xff] }
 0x783   :  { %v945_v60 = vpop.f32.mrf.mxu1 }
 0x784   :  { %v946_v61 = vadd.f32 %v945_v60, %v904_v22 }
 0x785   :  { %v2090_v43 = vpop.f32.mrf.mxu1 }
 0x786   :  { %v951_v62 = vsel %vm57_vm0, %v946_v61, 0.0 }
 0x787   :  { %952 = vadd.xlane.f32.xlu0 %v951_v62  ;;  %v948_v63 = vpop.f32.mrf.mxu1  ;;  %v2199_v62 = vld [vmem:[#allocation5 + $0x98] sm:$0xff]  }
 0x788   :  { %v2614_v63 = vld [vmem:[#allocation5 + $0xa0] sm:$0xff]  }
 0x789   :  { %v2091_v44 = vpop.f32.mrf.mxu1 }
 0x78a   :  { %v1060_v44 = vrot.slane %v2581_v45, %v767_v37 }
 0x78d   :  { %v2216_v0 = vpop.eup %2215 }
 0x78e   :  { %v841_v1 = vadd.f32 1.0, %v2216_v0 }
 0x790   :  { %v842_v2 = vmul.f32 %v841_v1, %v838_v35 }
 0x792   :  { %v845_v4 = vpack.c.bf16 %v842_v2, %v842_v2 }
 0x794   :  { %2083 = vmatmul.mubr.msk.bf16.vlgmr.msra.gmra.mxu0 %vm57_vm0, %v845_v4 }
 0x795   :  { %2094 = vmatprep.mubr.msk.bf16.mxu0 %vm2382_vm1, %v2381_v11  ;;  %2093 = vmatpush3.bf16.msra.mxu0 %v2198_v10 }
 0x796   :  { %2104 = vmatprep.subr.bf16.mxu0 %v2381_v11 }
 0x810   :  { %v953_v15 = vpop.xlane.xlu0 %952 }
 0x811   :  { %v954_v5 = vmul.f32 0.0625, %v953_v15 }
 0x813   :  { %v955_v7 = vsub.f32 %v946_v61, %v954_v5 }
 0x815   :  { %v956_v8 = vmul.f32 %v955_v7, %v955_v7 }
 0x817   :  { %v957_v9 = vsel %vm57_vm0, %v956_v8, 0.0  ;;  %v849_v8 = vrot.slane %v2581_v45, %v2532_v32 }
 0x818   :  { %958 = vadd.xlane.f32.xlu1 %v957_v9 }
 0x854   :  { %v2593_v12 = vpop.f32.mrf.mxu0 }
 0x855   :  { %v894_v9 = vadd.f32 %v2593_v12, %v849_v8 }
 0x856   :  { %v2084_v13 = vpop.f32.mrf.mxu0 }
 0x857   :  { %v1119_v13 = vrot.slane %v2461_v36, %v2532_v32 }
 0x858   :  { %v896_v14 = vpop.f32.mrf.mxu0 }
 0x85a   :  { %v2085_v20 = vpop.f32.mrf.mxu0 }
 0x8a1   :  { %v959_v21 = vpop.xlane.xlu1 %958 }
 0x8a2   :  { %v960_v23 = vmul.f32 0.0625, %v959_v21 }
 0x8a4   :  { %v961_v24 = vadd.f32 1e-05, %v960_v23 }
 0x8a6   :  { %2217 = vrsqrt.f32 %v961_v24 }
 0x8b3   :  { %v2218_v26 = vpop.eup %2217 }
 0x8b4   :  { %v963_v27 = vmul.f32 %v2218_v26, %v955_v7 }
 0x8b6   :  { %v968_v29 = vmul.f32 %v967_v25, %v963_v27 }
 0x8b8   :  { %v973_v30 = vadd.f32 %v972_v28, %v968_v29 }
 0x8ba   :  { %v976_v31 = vpack.c.bf16 %v973_v30, %v973_v30 }
 0x8bc   :  { %2095 = vmatmul.mubr.msk.bf16.vlgmr.msra.gmra.mxu0 %vm57_vm0, %v976_v31 }
 0x8bd   :  { %2106 = vmatprep.mubr.msk.bf16.mxu0 %vm2382_vm1, %v2381_v11  ;;  %2105 = vmatpush3.bf16.msra.mxu0 %v2199_v62 }
 0x8be   :  { %2116 = vmatprep.subr.bf16.mxu0 %v2381_v11 }
 0x97c   :  { %v1024_v40 = vpop.f32.mrf.mxu0 }
 0x97d   :  { %v1025_v16 = vadd.f32 %v1024_v40, %v980_v39 }
 0x97e   :  { %v2096_v41 = vpop.f32.mrf.mxu0 }
 0x97f   :  { %v1031_v46 = vsel %vm1030_vm7, %v1025_v16, 0.0 }
 0x980   :  { %1032 = vadd.xlane.f32.xlu0 %v1031_v46  ;;  %v1027_v18 = vpop.f32.mrf.mxu0 }
 0x982   :  { %v2097_v47 = vpop.f32.mrf.mxu0 }
 0xa09   :  { %v1033_v48 = vpop.xlane.xlu0 %1032 }
 0xa0a   :  { %v1035_v49 = vmul.f32 0.25, %v1033_v48 }
 0xa0c   :  { %v1036_v50 = vsub.f32 %v1025_v16, %v1035_v49 }
 0xa0e   :  { %v1037_v51 = vmul.f32 %v1036_v50, %v1036_v50 }
 0xa10   :  { %v1038_v52 = vsel %vm1030_vm7, %v1037_v51, 0.0 }
 0xa11   :  { %1039 = vadd.xlane.f32.xlu0 %v1038_v52 }
 0xa9a   :  { %v1040_v38 = vpop.xlane.xlu0 %1039 }
 0xa9b   :  { %v1041_v55 = vmul.f32 0.25, %v1040_v38 }
 0xa9d   :  { %v1042_v56 = vadd.f32 1e-05, %v1041_v55 }
 0xa9f   :  { %2219 = vrsqrt.f32 %v1042_v56 }
 0xaac   :  { %v2220_v58 = vpop.eup %2219 }
 0xaad   :  { %v1044_v22 = vmul.f32 %v2220_v58, %v1036_v50 }
 0xaaf   :  { %v1049_v60 = vmul.f32 %v1048_v57, %v1044_v22 }
 0xab1   :  { %v1054_v61 = vadd.f32 %v1904_v59, %v1049_v60 }
 0xab3   :  { %v1056_v43 = vpack.c.bf16 %v1054_v61, %v1054_v61 }
 0xab5   :  { %2101 = vmatmul.mubr.msk.bf16.vlgmr.msra.gmra.mxu1 %vm1030_vm7, %v1056_v43 }
 0xab6   :  { %2112 = vmatprep.mubr.msk.bf16.mxu1 %vm2382_vm1, %v2381_v11  ;;  %2111 = vmatpush3.bf16.msra.mxu1 %v2614_v63 }
 0xab7   :  { %2122 = vmatprep.subr.bf16.mxu1 %v2381_v11 }
 0xabd   :  { %2113 = vmatmul.mubr.bf16.vlgmr.msra.gmra.mxu1 %v2379_v3 }
 0xabe   :  { %2123 = vmatpush3.bf16.msra.mxu1 %v2614_v63  ;;  %2124 = vmatprep.mubr.msk.bf16.mxu1 %vm2382_vm1, %v2381_v11 }
 0xabf   :  { %2134 = vmatprep.subr.bf16.mxu1 %v2381_v11 }
 0xb75   :  { %v1101_v0 = vpop.f32.mrf.mxu1 }
 0xb76   :  { %v1102_v35 = vadd.f32 %v1101_v0, %v1060_v44 }
 0xb77   :  { %v2102_v1 = vpop.f32.mrf.mxu1 }
 0xb78   :  { %1108 = vrot.lane.b32.xlu0 %v1102_v35, %s2378_s27 }
 0xb79   :  { %v1104_v2 = vpop.f32.mrf.mxu1 }
 0xb7b   :  { %v2103_v4 = vpop.f32.mrf.mxu1 }
 0xb7d   :  { %v1221_v15 = vpop.f32.mrf.mxu1 }
 0xb7f   :  { %v2114_v3 = vpop.f32.mrf.mxu1 }
 0xb81   :  { %v1224_v5 = vpop.f32.mrf.mxu1 }
 0xb83   :  { %v2115_v7 = vpop.f32.mrf.mxu1 }
 0xbea   :  { %v1109_v34 = vpop.permute.xlu0 %1108 }
 0xbeb   :  { %v1112_v37 = vsel %vm1111_vm8, %v894_v9, %v1109_v34 }
 0xbec   :  { %v1115_v10 = vpack.c.bf16 %v1112_v37, %v1112_v37 }
 0xbee   :  { %2107 = vmatmul.mubr.msk.bf16.vlgmr.msra.gmra.mxu0 %vm57_vm0, %v1115_v10 }
 0xbef   :  { %2117 = vmatpush3.bf16.msra.mxu0 %v2614_v63  ;;  %2118 = vmatprep.mubr.msk.bf16.mxu0 %vm2382_vm1, %v2381_v11 }
 0xbf0   :  { %2128 = vmatprep.subr.bf16.mxu0 %v2381_v11 }
 0xcae   :  { %v1163_v45 = vpop.f32.mrf.mxu0 }
 0xcaf   :  { %v2639_v14 = vadd.f32 %v1163_v45, %v1119_v13 }
 0xcb0   :  { %v2108_v12 = vpop.f32.mrf.mxu0 }
 0xcb1   :  { %v1227_v20 = vadd.f32 %v1221_v15, %v2639_v14 }
 0xcb2   :  { %v1166_v21 = vpop.f32.mrf.mxu0 }
 0xcb3   :  { %2221 = vtanh.f32 %v1227_v20  ;;  %v1909_v25 = vmul.f32 -1.442695, %v1227_v20 }
 0xcb4   :  { %v2109_v23 = vpop.f32.mrf.mxu0 }
 0xcb5   :  { %2223 = vpow2.f32 %v1909_v25 }
 0xcc0   :  { %v2222_v24 = vpop.eup %2221 }
 0xcc1   :  { %1237 = vrot.lane.b32.xlu0 %v2222_v24, %s2383_s0 }
 0xcc2   :  { %v2224_v26 = vpop.eup %2223 }
 0xcc3   :  { %v1231_v27 = vadd.f32 1.0, %v2224_v26 }
 0xcc5   :  { %2225 = vrcp.f32 %v1231_v27 }
 0xcd2   :  { %v2226_v28 = vpop.eup %2225 }
 0xcd3   :  { %v1235_v29 = vmul.f32 0.0, %v2226_v28 }
 0xd33   :  { %v1238_v36 = vpop.permute.xlu0 %1237 }
 0xd34   :  { %v1240_v32 = vmul.f32 %v2226_v28, %v1238_v36 }
 0xd36   :  { %1242 = vrot.lane.b32.xlu1 %v1240_v32, %s2384_s2 }
 0xda8   :  { %v1243_v30 = vpop.permute.xlu1 %1242 }
 0xda9   :  { %v1245_v31 = vadd.f32 %v1243_v30, %v1235_v29 }
 0xdab   :  { %2227 = vtanh.f32 %v1245_v31 }
 0xdb8   :  { %v2228_v39 = vpop.eup %2227 }
 0xdb9   :  { %1248 = vrot.lane.b32.xlu0 %v2228_v39, %s2385_s30 }
 0xe2b   :  { %v1249_v40 = vpop.permute.xlu0 %1248 }
 0xe2c   :  { %v2645_v16 = vmul.f32 %v2226_v28, %v1249_v40 }
 0xe2e   :  { %v1267_v41 = vpack.c.bf16 %v2645_v16, %v2645_v16 }
 0xe30   :  { %1269 = vrot.lane.b32.xlu0 %v1267_v41, %s2386_s4 }
 0xea2   :  { %v1270_v46 = vpop.permute.xlu0 %1269 }
 0xea3   :  { %2119 = vmatmul.mubr.msk.bf16.vlgmr.msra.gmra.mxu0 %vm57_vm0, %v1270_v46 }
 0xea4   :  { %2129 = vmatpush3.bf16.msra.mxu0 %v2614_v63  ;;  %2130 = vmatprep.mubr.msk.bf16.mxu0 %vm2382_vm1, %v2381_v11 }
 0xea5   :  { %2140 = vmatprep.subr.bf16.mxu0 %v2381_v11 }
 0xf63   :  { %v1308_v18 = vpop.f32.mrf.mxu0 }
 0xf64   :  { %v1314_v47 = vadd.f32 %v1308_v18, %v2639_v14 }
 0xf65   :  { %v2120_v48 = vpop.f32.mrf.mxu0 }
 0xf66   :  { %2229 = vtanh.f32 %v1314_v47  ;;  %v1911_v52 = vmul.f32 -1.442695, %v1314_v47 }
 0xf67   :  { %v1311_v49 = vpop.f32.mrf.mxu0 }
 0xf68   :  { %2231 = vpow2.f32 %v1911_v52 }
 0xf69   :  { %v2121_v50 = vpop.f32.mrf.mxu0 }
 0xf73   :  { %v2230_v51 = vpop.eup %2229 }
 0xf74   :  { %1324 = vrot.lane.b32.xlu0 %v2230_v51, %s2383_s0 }
 0xf75   :  { %v2232_v53 = vpop.eup %2231 }
 0xf76   :  { %v1318_v54 = vadd.f32 1.0, %v2232_v53 }
 0xf78   :  { %2233 = vrcp.f32 %v1318_v54 }
 0xf85   :  { %v2234_v38 = vpop.eup %2233 }
 0xf86   :  { %v1322_v42 = vmul.f32 %v2234_v38, %v1245_v31 }
 0xfe6   :  { %v1325_v55 = vpop.permute.xlu0 %1324 }
 0xfe7   :  { %v1327_v56 = vmul.f32 %v2234_v38, %v1325_v55 }
 0xfe9   :  { %1329 = vrot.lane.b32.xlu0 %v1327_v56, %s2384_s2 }
0x105b   :  { %v1330_v57 = vpop.permute.xlu0 %1329 }
0x105c   :  { %v1332_v58 = vadd.f32 %v1330_v57, %v1322_v42 }
0x105e   :  { %2235 = vtanh.f32 %v1332_v58 }
0x106b   :  { %v2236_v22 = vpop.eup %2235 }
0x106c   :  { %1335 = vrot.lane.b32.xlu1 %v2236_v22, %s2385_s30 }
0x10de   :  { %v1336_v59 = vpop.permute.xlu1 %1335 }
0x10df   :  { %v2659_v60 = vmul.f32 %v2234_v38, %v1336_v59 }
0x10e1   :  { %v1350_v61 = vpack.c.bf16 %v2659_v60, %v2659_v60 }
0x10e3   :  { %1352 = vrot.lane.b32.xlu0 %v1350_v61, %s2386_s4 }
0x1155   :  { %v1353_v43 = vpop.permute.xlu0 %1352 }
0x1156   :  { %2125 = vmatmul.mubr.msk.bf16.vlgmr.msra.gmra.mxu1 %vm57_vm0, %v1353_v43 }
0x1157   :  { %2135 = vmatpush3.bf16.msra.mxu1 %v2614_v63  ;;  %2136 = vmatprep.mubr.msk.bf16.mxu1 %vm2382_vm1, %v2381_v11 }
0x1158   :  { %2146 = vmatprep.subr.bf16.mxu1 %v2381_v11 }
0x1216   :  { %v1391_v62 = vpop.f32.mrf.mxu1 }
0x1217   :  { %v1397_v44 = vadd.f32 %v1391_v62, %v2639_v14 }
0x1218   :  { %v2126_v0 = vpop.f32.mrf.mxu1 }
0x1219   :  { %2237 = vtanh.f32 %v1397_v44  ;;  %v1913_v4 = vmul.f32 -1.442695, %v1397_v44 }
0x121a   :  { %v1394_v35 = vpop.f32.mrf.mxu1 }
0x121b   :  { %2239 = vpow2.f32 %v1913_v4 }
0x121c   :  { %v2127_v1 = vpop.f32.mrf.mxu1 }
0x1226   :  { %v2238_v2 = vpop.eup %2237 }
0x1227   :  { %1407 = vrot.lane.b32.xlu1 %v2238_v2, %s2383_s0 }
0x1228   :  { %v2240_v15 = vpop.eup %2239 }
0x1229   :  { %v1401_v3 = vadd.f32 1.0, %v2240_v15 }
0x122b   :  { %2241 = vrcp.f32 %v1401_v3 }
0x1238   :  { %v2242_v5 = vpop.eup %2241 }
0x1239   :  { %v1405_v9 = vmul.f32 %v2242_v5, %v1332_v58 }
0x1299   :  { %v1408_v7 = vpop.permute.xlu1 %1407 }
0x129a   :  { %v1410_v8 = vmul.f32 %v2242_v5, %v1408_v7 }
0x129c   :  { %1412 = vrot.lane.b32.xlu0 %v1410_v8, %s2384_s2 }
0x130e   :  { %v1413_v34 = vpop.permute.xlu0 %1412 }
0x130f   :  { %v1415_v37 = vadd.f32 %v1413_v34, %v1405_v9 }
0x1311   :  { %2243 = vtanh.f32 %v1415_v37 }
0x131e   :  { %v2244_v10 = vpop.eup %2243 }
0x131f   :  { %1418 = vrot.lane.b32.xlu1 %v2244_v10, %s2385_s30 }
0x1391   :  { %v1419_v13 = vpop.permute.xlu1 %1418 }
0x1392   :  { %v2673_v45 = vmul.f32 %v2242_v5, %v1419_v13 }
0x1394   :  { %v1433_v12 = vpack.c.bf16 %v2673_v45, %v2673_v45 }
0x1396   :  { %1435 = vrot.lane.b32.xlu0 %v1433_v12, %s2386_s4 }
0x1408   :  { %v1436_v20 = vpop.permute.xlu0 %1435 }
0x1409   :  { %2131 = vmatmul.mubr.msk.bf16.vlgmr.msra.gmra.mxu0 %vm57_vm0, %v1436_v20 }
0x140a   :  { %2141 = vmatpush3.bf16.msra.mxu0 %v2614_v63  ;;  %2142 = vmatprep.mubr.msk.bf16.mxu0 %vm2382_vm1, %v2381_v11 }
0x140b   :  { %2152 = vmatprep.subr.bf16.mxu0 %v2381_v11 }
0x14c9   :  { %v1474_v21 = vpop.f32.mrf.mxu0 }
0x14ca   :  { %v1480_v23 = vadd.f32 %v1474_v21, %v2639_v14 }
0x14cb   :  { %v2132_v24 = vpop.f32.mrf.mxu0 }
0x14cc   :  { %2245 = vtanh.f32 %v1480_v23  ;;  %v1915_v28 = vmul.f32 -1.442695, %v1480_v23 }
0x14cd   :  { %v1477_v25 = vpop.f32.mrf.mxu0 }
0x14ce   :  { %2247 = vpow2.f32 %v1915_v28 }
0x14cf   :  { %v2133_v26 = vpop.f32.mrf.mxu0 }
0x14d9   :  { %v2246_v27 = vpop.eup %2245 }
0x14da   :  { %1490 = vrot.lane.b32.xlu1 %v2246_v27, %s2383_s0 }
0x14db   :  { %v2248_v36 = vpop.eup %2247 }
0x14dc   :  { %v1484_v32 = vadd.f32 1.0, %v2248_v36 }
0x14de   :  { %2249 = vrcp.f32 %v1484_v32 }
0x14eb   :  { %v2250_v29 = vpop.eup %2249 }
0x14ec   :  { %v1488_v39 = vmul.f32 %v2250_v29, %v1415_v37 }
0x154c   :  { %v1491_v30 = vpop.permute.xlu1 %1490 }
0x154d   :  { %v1493_v31 = vmul.f32 %v2250_v29, %v1491_v30 }
0x154f   :  { %1495 = vrot.lane.b32.xlu0 %v1493_v31, %s2384_s2 }
0x15c1   :  { %v1496_v40 = vpop.permute.xlu0 %1495 }
0x15c2   :  { %v1498_v41 = vadd.f32 %v1496_v40, %v1488_v39 }
0x15c4   :  { %2251 = vtanh.f32 %v1498_v41 }
0x15d1   :  { %v2252_v46 = vpop.eup %2251 }
0x15d2   :  { %1501 = vrot.lane.b32.xlu1 %v2252_v46, %s2385_s30 }
0x1644   :  { %v1502_v18 = vpop.permute.xlu1 %1501 }
0x1645   :  { %v2687_v47 = vmul.f32 %v2250_v29, %v1502_v18 }
0x1647   :  { %v1516_v48 = vpack.c.bf16 %v2687_v47, %v2687_v47 }
0x1649   :  { %1518 = vrot.lane.b32.xlu0 %v1516_v48, %s2386_s4 }
0x16bb   :  { %v1519_v49 = vpop.permute.xlu0 %1518 }
0x16bc   :  { %2137 = vmatmul.mubr.msk.bf16.vlgmr.msra.gmra.mxu1 %vm57_vm0, %v1519_v49 }
0x16bd   :  { %2147 = vmatpush3.bf16.msra.mxu1 %v2614_v63  ;;  %2148 = vmatprep.mubr.msk.bf16.mxu1 %vm2382_vm1, %v2381_v11 }
0x177c   :  { %v1557_v50 = vpop.f32.mrf.mxu1 }
0x177d   :  { %v1563_v51 = vadd.f32 %v1557_v50, %v2639_v14 }
0x177e   :  { %v2138_v52 = vpop.f32.mrf.mxu1 }
0x177f   :  { %2253 = vtanh.f32 %v1563_v51  ;;  %v1917_v55 = vmul.f32 -1.442695, %v1563_v51 }
0x1780   :  { %v1560_v53 = vpop.f32.mrf.mxu1 }
0x1781   :  { %2255 = vpow2.f32 %v1917_v55 }
0x1782   :  { %v2139_v54 = vpop.f32.mrf.mxu1 }
0x178c   :  { %v2254_v38 = vpop.eup %2253 }
0x178d   :  { %1573 = vrot.lane.b32.xlu1 %v2254_v38, %s2383_s0 }
0x178e   :  { %v2256_v56 = vpop.eup %2255 }
0x178f   :  { %v1567_v42 = vadd.f32 1.0, %v2256_v56 }
0x1791   :  { %2257 = vrcp.f32 %v1567_v42 }
0x179e   :  { %v2258_v57 = vpop.eup %2257 }
0x179f   :  { %v1571_v59 = vmul.f32 %v2258_v57, %v1498_v41 }
0x17ff   :  { %v1574_v58 = vpop.permute.xlu1 %1573 }
0x1800   :  { %v1576_v22 = vmul.f32 %v2258_v57, %v1574_v58  ;;  %v2387_v58 = vmov 2  }
0x1801   :  { %2179 = vset.pattern.permute.xlu1 %v2387_v58 }
0x1802   :  { %1578 = vrot.lane.b32.xlu0 %v1576_v22, %s2384_s2 }
0x1874   :  { %v1579_v61 = vpop.permute.xlu0 %1578 }
0x1875   :  { %v1581_v43 = vadd.f32 %v1579_v61, %v1571_v59  ;;  %v2285_v59 = vld [vmem:[#allocation7 + $0x88] sm:$0xff] }
0x1877   :  { %2259 = vtanh.f32 %v1581_v43 }
0x1884   :  { %v2260_v62 = vpop.eup %2259 }
0x1885   :  { %1584 = vrot.lane.b32.xlu1 %v2260_v62, %s2385_s30 }
0x18f7   :  { %v1585_v44 = vpop.permute.xlu1 %1584 }
0x18f8   :  { %v2700_v0 = vmul.f32 %v2258_v57, %v1585_v44 }
0x18fa   :  { %v1599_v35 = vpack.c.bf16 %v2700_v0, %v2700_v0 }
0x18fc   :  { %1601 = vrot.lane.b32.xlu0 %v1599_v35, %s2386_s4 }
0x196e   :  { %v1602_v1 = vpop.permute.xlu0 %1601 }
0x196f   :  { %2143 = vmatmul.mubr.msk.bf16.vlgmr.msra.gmra.mxu0 %vm57_vm0, %v1602_v1 }
0x1970   :  { %2153 = vmatpush3.bf16.msra.mxu0 %v2614_v63  ;;  %2154 = vmatprep.mubr.msk.bf16.mxu0 %vm2382_vm1, %v2381_v11 }
0x1a2f   :  { %v1640_v2 = vpop.f32.mrf.mxu0 }
0x1a30   :  { %v1646_v4 = vadd.f32 %v1640_v2, %v2639_v14 }
0x1a31   :  { %v2144_v15 = vpop.f32.mrf.mxu0 }
0x1a32   :  { %2261 = vtanh.f32 %v1646_v4  ;;  %v1919_v8 = vmul.f32 -1.442695, %v1646_v4 }
0x1a33   :  { %v1643_v3 = vpop.f32.mrf.mxu0 }
0x1a34   :  { %2263 = vpow2.f32 %v1919_v8 }
0x1a35   :  { %v2145_v5 = vpop.f32.mrf.mxu0 }
0x1a3f   :  { %v2262_v7 = vpop.eup %2261 }
0x1a40   :  { %1656 = vrot.lane.b32.xlu1 %v2262_v7, %s2383_s0 }
0x1a41   :  { %v2264_v9 = vpop.eup %2263 }
0x1a42   :  { %v1650_v34 = vadd.f32 1.0, %v2264_v9 }
0x1a44   :  { %2265 = vrcp.f32 %v1650_v34 }
0x1a51   :  { %v2266_v37 = vpop.eup %2265 }
0x1a52   :  { %v1654_v11 = vmul.f32 %v2266_v37, %v1581_v43 }
0x1ab2   :  { %v1657_v63 = vpop.permute.xlu1 %1656 }
0x1ab3   :  { %v1659_v10 = vmul.f32 %v2266_v37, %v1657_v63 }
0x1ab5   :  { %1661 = vrot.lane.b32.xlu0 %v1659_v10, %s2384_s2 }
0x1b27   :  { %v1662_v13 = vpop.permute.xlu0 %1661 }
0x1b28   :  { %v1664_v12 = vadd.f32 %v1662_v13, %v1654_v11 }
0x1b2a   :  { %2267 = vtanh.f32 %v1664_v12 }
0x1b37   :  { %v2268_v20 = vpop.eup %2267 }
0x1b38   :  { %1667 = vrot.lane.b32.xlu1 %v2268_v20, %s2385_s30 }
0x1baa   :  { %v1668_v21 = vpop.permute.xlu1 %1667 }
0x1bab   :  { %v2713_v23 = vmul.f32 %v2266_v37, %v1668_v21 }
0x1bad   :  { %v1682_v24 = vpack.c.bf16 %v2713_v23, %v2713_v23 }
0x1baf   :  { %1684 = vrot.lane.b32.xlu0 %v1682_v24, %s2386_s4 }
0x1c21   :  { %v1685_v25 = vpop.permute.xlu0 %1684 }
0x1c22   :  { %2149 = vmatmul.mubr.msk.bf16.vlgmr.msra.gmra.mxu1 %vm57_vm0, %v1685_v25 }
0x1ce2   :  { %v1723_v26 = vpop.f32.mrf.mxu1 }
0x1ce3   :  { %v1729_v27 = vadd.f32 %v1723_v26, %v2639_v14 }
0x1ce4   :  { %v2150_v28 = vpop.f32.mrf.mxu1 }
0x1ce5   :  { %2269 = vtanh.f32 %v1729_v27  ;;  %v1921_v30 = vmul.f32 -1.442695, %v1729_v27 }
0x1ce6   :  { %v1726_v36 = vpop.f32.mrf.mxu1 }
0x1ce7   :  { %2271 = vpow2.f32 %v1921_v30  ;;  %v1177_v30 = vand.u32 127, %v105_v33 }
0x1ce8   :  { %v2151_v32 = vpop.f32.mrf.mxu1 }
0x1ce9   :  { %vm1264_vm9 = vcmp.eq.s32.totalorder %v1177_v30, 0  ;;  %vm1347_vm10 = vcmp.eq.s32.totalorder %v1177_v30, 1  ;;  %vm1430_vm11 = vcmp.eq.s32.totalorder %v1177_v30, 2  ;;  %vm1513_vm12 = vcmp.eq.s32.totalorder %v1177_v30, 3 }
0x1cea   :  { %vm1596_vm13 = vcmp.eq.s32.totalorder %v1177_v30, 4  ;;  %vm1679_vm14 = vcmp.eq.s32.totalorder %v1177_v30, 5  ;;  %vm1762_vm15 = vcmp.eq.s32.totalorder %v1177_v30, 6  ;;  %vm1845_vm1 = vcmp.eq.s32.totalorder %v1177_v30, 7 }
0x1cf2   :  { %v2270_v29 = vpop.eup %2269 }
0x1cf3   :  { %1739 = vrot.lane.b32.xlu1 %v2270_v29, %s2383_s0  ;;  %v2389_v29 = vmov 3  }
0x1cf4   :  { %v2272_v31 = vpop.eup %2271  ;;  %2180 = vset.pattern.permute.xlu0 %v2389_v29 }
0x1cf5   :  { %v1733_v39 = vadd.f32 1.0, %v2272_v31 }
0x1cf7   :  { %2273 = vrcp.f32 %v1733_v39 }
0x1d04   :  { %v2274_v40 = vpop.eup %2273 }
0x1d05   :  { %v1737_v18 = vmul.f32 %v2274_v40, %v1664_v12 }
0x1d65   :  { %v1740_v41 = vpop.permute.xlu1 %1739 }
0x1d66   :  { %v1742_v46 = vmul.f32 %v2274_v40, %v1740_v41 }
0x1d68   :  { %1744 = vrot.lane.b32.xlu0 %v1742_v46, %s2384_s2 }
0x1dda   :  { %v1745_v48 = vpop.permute.xlu0 %1744 }
0x1ddb   :  { %v1747_v49 = vadd.f32 %v1745_v48, %v1737_v18 }
0x1ddd   :  { %2275 = vtanh.f32 %v1747_v49 }
0x1dea   :  { %v2276_v50 = vpop.eup %2275 }
0x1deb   :  { %1750 = vrot.lane.b32.xlu1 %v2276_v50, %s2385_s30 }
0x1e5d   :  { %v1751_v51 = vpop.permute.xlu1 %1750 }
0x1e5e   :  { %v1753_v52 = vmul.f32 %v2274_v40, %v1751_v51 }
0x1e60   :  { %v1765_v53 = vpack.c.bf16 %v1753_v52, %v1753_v52 }
0x1e62   :  { %1767 = vrot.lane.b32.xlu0 %v1765_v53, %s2386_s4 }
0x1ed4   :  { %v1768_v54 = vpop.permute.xlu0 %1767 }
0x1ed5   :  { %2155 = vmatmul.mubr.msk.bf16.vlgmr.msra.gmra.mxu0 %vm57_vm0, %v1768_v54 }
0x1f95   :  { %v1806_v38 = vpop.f32.mrf.mxu0 }
0x1f96   :  { %v1812_v55 = vadd.f32 %v1806_v38, %v2639_v14  ;;  %v102_v14 = vld [vmem:[#allocation7 + $0x90] sm:$0xff] }
0x1f97   :  { %v2156_v56 = vpop.f32.mrf.mxu0 }
0x1f98   :  { %2277 = vtanh.f32 %v1812_v55  ;;  %v1923_v61 = vmul.f32 -1.442695, %v1812_v55 }
0x1f99   :  { %v1809_v42 = vpop.f32.mrf.mxu0 }
0x1f9a   :  { %2279 = vpow2.f32 %v1923_v61 }
0x1f9b   :  { %v2157_v57 = vpop.f32.mrf.mxu0 }
0x1fa5   :  { %v2278_v22 = vpop.eup %2277 }
0x1fa6   :  { %1822 = vrot.lane.b32.xlu1 %v2278_v22, %s2383_s0 }
0x1fa7   :  { %v2280_v43 = vpop.eup %2279 }
0x1fa8   :  { %v1816_v62 = vadd.f32 1.0, %v2280_v43 }
0x1faa   :  { %1172 = vperm.xlu1 %2179, %v2285_v59   ;;  %2281 = vrcp.f32 %v1816_v62 }
0x1fb7   :  { %v2282_v44 = vpop.eup %2281 }
0x1fb8   :  { %v1820_v2 = vmul.f32 %v2282_v44, %v1747_v49 }
0x2018   :  { %v1823_v35 = vpop.permute.xlu1 %1822 }
0x2019   :  { %v1825_v1 = vmul.f32 %v2282_v44, %v1823_v35 }
0x201b   :  { %1827 = vrot.lane.b32.xlu0 %v1825_v1, %s2384_s2 }
0x201f   :  { %1253 = vrot.lane.b32.xlu0 %v102_v14, %s2388_s5 }
0x2025   :  { %v1173_v9 = vpop.permute.xlu1 %1172 }
0x208d   :  { %v1828_v4 = vpop.permute.xlu0 %1827 }
0x208e   :  { %v1830_v15 = vadd.f32 %v1828_v4, %v1820_v2 }
0x2090   :  { %2283 = vtanh.f32 %v1830_v15 }
0x2091   :  { %v1254_v3 = vpop.permute.xlu0 %1253 }
0x2092   :  { %v1256_v5 = vmul.f32 %v1254_v3, %v2645_v16  ;;  %v1339_v7 = vmul.f32 %v2659_v60, %v1254_v3  ;;  %v1422_v16 = vmul.f32 %v2673_v45, %v1254_v3  ;;  %v1588_v60 = vmul.f32 %v2700_v0, %v1254_v3 }
0x2093   :  { %v1671_v11 = vmul.f32 %v2713_v23, %v1254_v3  ;;  %v1754_v20 = vmul.f32 %v1753_v52, %v1254_v3  ;;  %v1505_v32 = vmul.f32 %v2687_v47, %v1254_v3 }
0x2094   :  { %1258 = vrot.lane.b32.xlu1 %v1256_v5, %s2386_s4 }
0x2098   :  { %1341 = vrot.lane.b32.xlu1 %v1339_v7, %s2386_s4 }
0x209d   :  { %v2284_v8 = vpop.eup %2283 }
0x209e   :  { %1833 = vrot.lane.b32.xlu1 %v2284_v8, %s2385_s30 }
0x2106   :  { %v1259_v34 = vpop.permute.xlu1 %1258 }
0x2107   :  { %v1261_v37 = vsel %vm57_vm0, %v1259_v34, 0.0 }
0x2108   :  { %1262 = vadd.xlane.f32.xlu0 %v1261_v37 }
0x210a   :  { %v1342_v63 = vpop.permute.xlu1 %1341 }
0x210b   :  { %v1344_v10 = vsel %vm57_vm0, %v1342_v63, 0.0 }
0x210c   :  { %1345 = vadd.xlane.f32.xlu1 %v1344_v10 }
0x2110   :  { %v1834_v13 = vpop.permute.xlu1 %1833 }
0x2111   :  { %v1836_v12 = vmul.f32 %v2282_v44, %v1834_v13 }
0x2113   :  { %v1837_v21 = vmul.f32 %v1836_v12, %v1254_v3 }
0x211e   :  { %1424 = vrot.lane.b32.xlu0 %v1422_v16, %s2386_s4 }
0x2122   :  { %1590 = vrot.lane.b32.xlu0 %v1588_v60, %s2386_s4 }
0x2126   :  { %1673 = vrot.lane.b32.xlu0 %v1671_v11, %s2386_s4 }
0x212a   :  { %1756 = vrot.lane.b32.xlu0 %v1754_v20, %s2386_s4 }
0x212e   :  { %1839 = vrot.lane.b32.xlu0 %v1837_v21, %s2386_s4 }
0x2191   :  { %v1263_v24 = vpop.xlane.xlu0 %1262 }
0x2192   :  { %v1265_v39 = vsel %vm1264_vm9, %v1263_v24, 0.0 }
0x2193   :  { %v1266_v41 = vadd.f32 %v1265_v39, %v1173_v9 }
0x2195   :  { %v1425_v45 = vpop.permute.xlu0 %1424  ;;  %v1346_v31 = vpop.xlane.xlu1 %1345 }
0x2196   :  { %v1427_v25 = vsel %vm57_vm0, %v1425_v45, 0.0  ;;  %v1348_v40 = vsel %vm1347_vm10, %v1346_v31, 0.0 }
0x2197   :  { %1428 = vadd.xlane.f32.xlu1 %v1427_v25  ;;  %v1349_v46 = vadd.f32 %v1348_v40, %v1266_v41 }
0x2199   :  { %v1591_v0 = vpop.permute.xlu0 %1590 }
0x219a   :  { %v1593_v26 = vsel %vm57_vm0, %v1591_v0, 0.0 }
0x219b   :  { %1594 = vadd.xlane.f32.xlu0 %v1593_v26 }
0x219d   :  { %v1674_v23 = vpop.permute.xlu0 %1673 }
0x219e   :  { %v1676_v27 = vsel %vm57_vm0, %v1674_v23, 0.0 }
0x219f   :  { %1677 = vadd.xlane.f32.xlu0 %v1676_v27 }
0x21a1   :  { %v1757_v28 = vpop.permute.xlu0 %1756 }
0x21a2   :  { %v1759_v36 = vsel %vm57_vm0, %v1757_v28, 0.0 }
0x21a3   :  { %1760 = vadd.xlane.f32.xlu0 %v1759_v36 }
0x21a5   :  { %v1840_v51 = vpop.permute.xlu0 %1839 }
0x21a6   :  { %v1842_v52 = vsel %vm57_vm0, %v1840_v51, 0.0 }
0x21a8   :  { %1507 = vrot.lane.b32.xlu1 %v1505_v32, %s2386_s4 }
0x21b9   :  { %1850 = vperm.xlu0 %2180, %v2285_v59  }
0x2220   :  { %v1429_v18 = vpop.xlane.xlu1 %1428 }
0x2221   :  { %v1431_v48 = vsel %vm1430_vm11, %v1429_v18, 0.0 }
0x2222   :  { %v1432_v49 = vadd.f32 %v1431_v48, %v1349_v46 }
0x2224   :  { %v1508_v50 = vpop.permute.xlu1 %1507  ;;  %v1595_v33 = vpop.xlane.xlu0 %1594 }
0x2225   :  { %v1510_v47 = vsel %vm57_vm0, %v1508_v50, 0.0  ;;  %v1597_v56 = vsel %vm1596_vm13, %v1595_v33, 0.0 }
0x2226   :  { %1511 = vadd.xlane.f32.xlu1 %v1510_v47 }
0x2228   :  { %v1678_v53 = vpop.xlane.xlu0 %1677 }
0x2229   :  { %v1680_v58 = vsel %vm1679_vm14, %v1678_v53, 0.0 }
0x222a   :  { %1843 = vadd.xlane.f32.xlu1 %v1842_v52 }
0x222c   :  { %v1761_v42 = vpop.xlane.xlu0 %1760 }
0x222d   :  { %v1763_v61 = vsel %vm1762_vm15, %v1761_v42, 0.0 }
0x2234   :  { %v1851_v35 = vpop.permute.xlu0 %1850 }
0x22af   :  { %v1512_v54 = vpop.xlane.xlu1 %1511 }
0x22b0   :  { %v1514_v38 = vsel %vm1513_vm12, %v1512_v54, 0.0 }
0x22b1   :  { %v1515_v55 = vadd.f32 %v1514_v38, %v1432_v49 }
0x22b3   :  { %v1598_v57 = vadd.f32 %v1597_v56, %v1515_v55  ;;  %v1844_v59 = vpop.xlane.xlu1 %1843 }
0x22b4   :  { %v1846_v62 = vsel %vm1845_vm1, %v1844_v59, 0.0 }
0x22b5   :  { %v1681_v22 = vadd.f32 %v1680_v58, %v1598_v57 }
0x22b7   :  { %v1764_v43 = vadd.f32 %v1763_v61, %v1681_v22 }
0x22b9   :  { %v1847_v44 = vadd.f32 %v1846_v62, %v1764_v43 }
0x22bb   :  { %v1848_v1 = vsub.f32 %v1847_v44, %v2436_v19 }
0x22bd   :  { %v1853_v14 = vmul.f32 %v1851_v35, %v1848_v1 }
0x22bf   :  { %v1854_v2 = vmul.f32 %v1853_v14, %v2434_v17 }
0x22c1   :  { %v1855_v4 = vadd.f32 %v1854_v2, %v2423_v6 }
0x22c3   :  { %1856 = vst.msk [vmem:[#allocation8] sm:$0xff] %vm1111_vm8, %v1855_v4 }
0x22c4   :  { %2357 = shalt.err (!%p2354_p5)
}
0x22c5   :  { %1866 = dma.vmem_to_hbm [thread:$0]  %s1864_s7, 128, %s2762_s3, [#allocation4]  }
0x22c6   :  { %2370 = dma.done.wait [#allocation4], 128  }
0x22c7   :  { %2371 = vsyncadd [#allocation4], 4294967168 }
0x22c8   :  { %1870 = vsyncpa [#allocation3], 1 }
0x22c9   :  { %1871 = vsyncpa [#allocation6], 1 }
0x22ca   :  { %1872 = vsyncpa [#allocation4], 1 }

</bundles_post_ra>
